<compile_context>
chip_gen: v7x
topology: tpu7x:2x2x1
jax: 0.10.0
libtpu: 0.0.40
codegen_flags: <defaults>
</compile_context>

<pallas_src>
import math
from functools import partial

import numpy as np
import jax
import jax.numpy as jnp
from jax.experimental import pallas as pl
from jax.experimental.pallas import tpu as pltpu


# ---------------------------------------------------------------------------
# Scoped-VMEM limit: above the 16/32 MiB defaults, below physical on all gens.
# ---------------------------------------------------------------------------

def _vmem_limit_bytes():
    try:
        cap = int(pltpu.get_tpu_info().vmem_capacity_bytes)
        return min((cap * 85) // 100, 100 * 1024 * 1024)
    except Exception:
        return 48 * 1024 * 1024            # safe on v5e/v6e/v7x


_VMEM_LIMIT = _vmem_limit_bytes()


# ---------------------------------------------------------------------------
# Elementwise helpers (f32)
# ---------------------------------------------------------------------------

def _gelu_tanh(x):
    # tanh-approx GELU: tanh goes to the EUP slot (VALU stays free).
    c = 0.7978845608028654                      # sqrt(2/pi)
    return 0.5 * x * (1.0 + jnp.tanh(c * (x + 0.044715 * x * x * x)))


def _layernorm(z, g, b, eps=1e-6):
    mu = jnp.mean(z, axis=-1, keepdims=True)
    var = jnp.mean((z - mu) ** 2, axis=-1, keepdims=True)
    return (z - mu) * jax.lax.rsqrt(var + eps) * g + b


# ---------------------------------------------------------------------------
# Kernel 1: patch embed + cls token + pos embed (+ pad to S_pad)
# ---------------------------------------------------------------------------

def _embed_kernel(p_ref, w_ref, b_ref, cls_ref, pos_ref, o_ref,
                  *, batch, n_patch, seq_pad):
    bf16 = jnp.bfloat16
    # One big matmul over all patches of all batch elements.
    tok = jnp.dot(p_ref[...].astype(bf16), w_ref[...],
                  preferred_element_type=jnp.float32) + b_ref[...]   # (B*N, D)
    d = tok.shape[-1]
    pos = pos_ref[...]                                               # (Sp, D)
    cls_row = cls_ref[...]                                           # (1, D)
    npad = seq_pad - 1 - n_patch
    for b in range(batch):                     # tiny static unroll over batch
        body = tok[b * n_patch:(b + 1) * n_patch, :]
        pieces = [cls_row, body]
        if npad > 0:
            pieces.append(jnp.zeros((npad, d), jnp.float32))
        tile = jnp.concatenate(pieces, axis=0) + pos                 # (Sp, D)
        # single aligned full-width store per batch element
        o_ref[b * seq_pad:(b + 1) * seq_pad, :] = tile


def embed_tokens(patches_flat, wpe, bpe, cls, pos_pad, *, batch, n_patch,
                 seq_pad):
    d = wpe.shape[1]
    return pl.pallas_call(
        partial(_embed_kernel, batch=batch, n_patch=n_patch, seq_pad=seq_pad),
        out_shape=jax.ShapeDtypeStruct((batch * seq_pad, d), jnp.float32),
        compiler_params=pltpu.CompilerParams(vmem_limit_bytes=_VMEM_LIMIT),
    )(patches_flat, wpe, bpe, cls, pos_pad)


# ---------------------------------------------------------------------------
# Kernel 2: fused ViT backbone — grid=(layer,), batch folded into the kernel
# ---------------------------------------------------------------------------

def _backbone_kernel(x0_ref, ln1g_ref, ln1b_ref, wqkv_ref, bqkv_ref,
                     wproj_ref, bproj_ref, ln2g_ref, ln2b_ref,
                     wfc1_ref, bfc1_ref, wfc2_ref, bfc2_ref,
                     cls_ref, x_s, *, num_heads, batch, seq, seq_pad):
    # NOTE: x_s carries the activation across grid steps; the (single) layer
    # grid axis MUST stay sequential ("arbitrary").
    l = pl.program_id(0)

    @pl.when(l == 0)
    def _():
        x_s[...] = x0_ref[...]                        # (B*Sp, D) f32

    bf16 = jnp.bfloat16
    x = x_s[...]
    d = x.shape[-1]
    dh = d // num_heads
    scale = 1.0 / math.sqrt(dh)

    # --- attention branch (pre-norm) ---
    xn = _layernorm(x, ln1g_ref[0], ln1b_ref[0])
    qkv = jnp.dot(xn.astype(bf16), wqkv_ref[0],
                  preferred_element_type=jnp.float32) + bqkv_ref[0]  # (B*Sp,3D)
    q = qkv[:, 0 * d:1 * d]
    k = qkv[:, 1 * d:2 * d]
    v = qkv[:, 2 * d:3 * d]

    if seq_pad > seq:                                  # mask padded keys
        key_pos = jax.lax.broadcasted_iota(jnp.int32, (1, seq_pad), 1)
        key_bias = jnp.where(key_pos < seq, 0.0, -1e30).astype(jnp.float32)
    else:
        key_bias = None

    wproj = wproj_ref[0]                               # (D, D) bf16
    bproj = bproj_ref[0]                               # (1, D) f32

    for b in range(batch):                             # small static unroll
        r0, r1 = b * seq_pad, (b + 1) * seq_pad
        attn_b = None
        for h in range(num_heads):                     # head concat folded
            c0, c1 = h * dh, (h + 1) * dh              # into the projection
            qh = q[r0:r1, c0:c1].astype(bf16)
            kh = k[r0:r1, c0:c1].astype(bf16)
            vh = v[r0:r1, c0:c1].astype(bf16)
            sc = jax.lax.dot_general(qh, kh, (((1,), (1,)), ((), ())),
                                     preferred_element_type=jnp.float32)
            sc = sc * scale
            if key_bias is not None:
                sc = sc + key_bias
            sc = sc - jnp.max(sc, axis=-1, keepdims=True)
            e = jnp.exp(sc)
            p_attn = e * pl.reciprocal(jnp.sum(e, axis=-1, keepdims=True),
                                       approx=True)
            o_h = jnp.dot(p_attn.astype(bf16), vh,
                          preferred_element_type=jnp.float32)        # (Sp,dh)
            contrib = jnp.dot(o_h.astype(bf16), wproj[c0:c1, :],
                              preferred_element_type=jnp.float32)    # (Sp, D)
            attn_b = contrib if attn_b is None else attn_b + contrib
        x_s[r0:r1, :] = x[r0:r1, :] + attn_b + bproj   # aligned full-width st

    x1 = x_s[...]

    # --- MLP branch (pre-norm) ---
    xn2 = _layernorm(x1, ln2g_ref[0], ln2b_ref[0])
    hid = jnp.dot(xn2.astype(bf16), wfc1_ref[0],
                  preferred_element_type=jnp.float32) + bfc1_ref[0]
    hid = _gelu_tanh(hid)
    mlp = jnp.dot(hid.astype(bf16), wfc2_ref[0],
                  preferred_element_type=jnp.float32) + bfc2_ref[0]
    x2 = x1 + mlp
    x_s[...] = x2                                      # carry across layers

    # cls token (row 0 of every batch slab) after this layer
    cls_rows = [x2[b * seq_pad:b * seq_pad + 1, :] for b in range(batch)]
    cls_mat = cls_rows[0] if batch == 1 else jnp.concatenate(cls_rows, axis=0)
    cls_ref[...] = cls_mat[None]                       # (1, B, D)


def backbone(x0_flat, params, num_heads, batch, seq, seq_pad):
    bs, d = x0_flat.shape
    L = params['wqkv'].shape[0]
    names = ('ln1g', 'ln1b', 'wqkv', 'bqkv', 'wproj', 'bproj',
             'ln2g', 'ln2b', 'wfc1', 'bfc1', 'wfc2', 'bfc2')
    args = [params[k] for k in names]
    w_specs = [pl.BlockSpec((1,) + params[k].shape[1:], lambda l: (l, 0, 0))
               for k in names]
    return pl.pallas_call(
        partial(_backbone_kernel, num_heads=num_heads, batch=batch,
                seq=seq, seq_pad=seq_pad),
        out_shape=jax.ShapeDtypeStruct((L, batch, d), jnp.float32),
        grid=(L,),
        in_specs=[pl.BlockSpec((bs, d), lambda l: (0, 0))] + w_specs,
        out_specs=pl.BlockSpec((1, batch, d), lambda l: (l, 0, 0)),
        scratch_shapes=[pltpu.VMEM((bs, d), jnp.float32)],
        compiler_params=pltpu.CompilerParams(
            dimension_semantics=("arbitrary",),       # layer axis: sequential
            vmem_limit_bytes=_VMEM_LIMIT),
    )(x0_flat, *args)


# ---------------------------------------------------------------------------
# Kernel 3: SVP heads + cross-entropy + feature-alignment losses, grid=(chunk,)
# ---------------------------------------------------------------------------

def _svp_losses_kernel(cls_ref, rt_ref, oh_ref, ce_ref, fa_ref, prev_v):
    c = pl.program_id(0)
    h = cls_ref[0]                                     # (B, D) f32
    rt = rt_ref[0]                                     # (D, NC) f32
    oh = oh_ref[...]                                   # (B, NC) f32
    # F.linear(h, R) == h @ R.T ; R stored pre-transposed -> plain dot.
    v = jnp.dot(h, rt, preferred_element_type=jnp.float32)           # (B, NC)
    b, nc = v.shape

    m = jnp.max(v, axis=1, keepdims=True)
    lse = m + jnp.log(jnp.sum(jnp.exp(v - m), axis=1, keepdims=True))
    logp = v - lse
    ce = -jnp.sum(jnp.sum(oh * logp, axis=1, keepdims=True),
                  axis=0, keepdims=True) / b                          # (1, 1)

    @pl.when(c == 0)
    def _():
        ce_ref[...] = jnp.zeros_like(ce_ref)
        fa_ref[...] = jnp.zeros_like(fa_ref)

    ce_ref[...] += ce

    @pl.when(c > 0)
    def _():
        def nrm(z):
            n = jnp.sqrt(jnp.sum(z * z, axis=1, keepdims=True))
            return z / jnp.maximum(n, 1e-12)
        diff = nrm(v) - nrm(prev_v[...])
        fa = jnp.sum(jnp.sum(diff * diff, axis=1, keepdims=True),
                     axis=0, keepdims=True) / (b * nc)
        fa_ref[...] = fa_ref[...] + fa

    prev_v[...] = v


def svp_losses(cls_sel, Rt, onehot):
    C, B, D = cls_sel.shape
    NC = Rt.shape[-1]
    return pl.pallas_call(
        _svp_losses_kernel,
        out_shape=(jax.ShapeDtypeStruct((1, 1), jnp.float32),
                   jax.ShapeDtypeStruct((1, 1), jnp.float32)),
        grid=(C,),
        in_specs=[pl.BlockSpec((1, B, D), lambda c: (c, 0, 0)),
                  pl.BlockSpec((1, D, NC), lambda c: (c, 0, 0)),
                  pl.BlockSpec((B, NC), lambda c: (0, 0))],
        out_specs=(pl.BlockSpec((1, 1), lambda c: (0, 0)),
                   pl.BlockSpec((1, 1), lambda c: (0, 0))),
        scratch_shapes=[pltpu.VMEM((B, NC), jnp.float32)],
        compiler_params=pltpu.CompilerParams(
            dimension_semantics=("arbitrary",),        # prev_v carry + accum
            vmem_limit_bytes=_VMEM_LIMIT),
    )(cls_sel, Rt, onehot)


# ---------------------------------------------------------------------------
# Glue: parameter init, patch extraction, full forward
# ---------------------------------------------------------------------------

def extract_patches(x, p):
    b, c, h, w = x.shape
    hp, wp = h // p, w // p
    x = x.reshape(b, c, hp, p, wp, p)
    x = jnp.transpose(x, (0, 2, 4, 1, 3, 5))           # B, Hp, Wp, C, P, P
    return x.reshape(b, hp * wp, c * p * p)


def init_params(key, cfg):
    d = cfg['embed_dim']
    c = cfg['in_chans']
    p = cfg['patch']
    n = (cfg['img'] // p) ** 2
    s = n + 1
    s_pad = ((s + 7) // 8) * 8
    nc = cfg['num_classes']
    dmlp = cfg['mlp_ratio'] * d
    L = cfg['depth']

    keys = jax.random.split(key, 9)
    nrm = lambda k, shape, scale=0.02: scale * jax.random.normal(
        k, shape, jnp.float32)

    pos = nrm(keys[3], (s, d))
    if s_pad > s:
        pos = jnp.concatenate([pos, jnp.zeros((s_pad - s, d), jnp.float32)],
                              axis=0)

    params = dict(
        # Conv2d(kernel=P, stride=P) folded to a (K, D) matmul weight (bf16).
        wpe=nrm(keys[0], (d, c * p * p)).T.astype(jnp.bfloat16),
        bpe=nrm(keys[1], (1, d)),
        cls=nrm(keys[2], (1, d)),
        pos=pos,                                       # padded to (Sp, D)
        # Per-layer params stacked along a leading layer axis.
        ln1g=jnp.ones((L, 1, d), jnp.float32),
        ln1b=jnp.zeros((L, 1, d), jnp.float32),
        ln2g=jnp.ones((L, 1, d), jnp.float32),
        ln2b=jnp.zeros((L, 1, d), jnp.float32),
        wqkv=nrm(keys[4], (L, d, 3 * d)).astype(jnp.bfloat16),
        bqkv=jnp.zeros((L, 1, 3 * d), jnp.float32),
        wproj=nrm(keys[5], (L, d, d)).astype(jnp.bfloat16),
        bproj=jnp.zeros((L, 1, d), jnp.float32),
        wfc1=nrm(keys[6], (L, d, dmlp)).astype(jnp.bfloat16),
        bfc1=jnp.zeros((L, 1, dmlp), jnp.float32),
        wfc2=nrm(keys[7], (L, dmlp, d)).astype(jnp.bfloat16),
        bfc2=jnp.zeros((L, 1, d), jnp.float32),
    )
    # np.array_split over blocks, drop empty chunks (mirrors the module)
    idx_chunks = [ci for ci in np.array_split(np.arange(L), cfg['num_chunks'])
                  if len(ci) > 0]
    chunk_ends = tuple(int(ci[-1]) for ci in idx_chunks)
    C = len(chunk_ends)
    R = jax.random.normal(keys[8], (C, nc, d), jnp.float32) / math.sqrt(nc)
    params['Rt'] = jnp.transpose(R, (0, 2, 1))         # (C, D, NC) pre-T
    return params, chunk_ends, s, s_pad


def svp7plus_forward(params, x_img, target, *, cfg, chunk_ends, seq, seq_pad):
    B = x_img.shape[0]
    D = cfg['embed_dim']
    patches = extract_patches(x_img, cfg['patch'])                  # (B, N, K)
    N = patches.shape[1]
    patches_flat = patches.reshape(B * N, patches.shape[-1])

    x0 = embed_tokens(patches_flat, params['wpe'], params['bpe'],
                      params['cls'], params['pos'],
                      batch=B, n_patch=N, seq_pad=seq_pad)      # (B*Sp, D)
    # pos_drop: identity (eval-mode)

    cls_all = backbone(x0, params, cfg['num_heads'], B, seq, seq_pad)  # (L,B,D)
    cls_sel = cls_all[jnp.asarray(chunk_ends, dtype=jnp.int32)]        # (C,B,D)

    # SVPLayer dropout: identity (eval-mode)
    onehot = jax.nn.one_hot(target, cfg['num_classes'], dtype=jnp.float32)
    ce, fa = svp_losses(cls_sel, params['Rt'], onehot)
    ce = ce[0, 0]
    fa = fa[0, 0]
    return ce + fa, ce, fa


# ---------------------------------------------------------------------------
# Main
# ---------------------------------------------------------------------------

if __name__ == "__main__":
    # Small, forward-consistent config (scaled-down ViT):
    #   img 32x32, patch 16 -> 4 patches + cls = seq 5 (padded to 8);
    #   embed_dim 32, 2 heads, mlp 4x, depth 4 split into num_chunks=7
    #   -> 4 non-empty SVP chunks.
    cfg = dict(img=32, patch=16, in_chans=3, embed_dim=32, num_heads=2,
               mlp_ratio=4, depth=4, num_chunks=7, num_classes=10)

    key = jax.random.PRNGKey(0)
    kp, kx, kt = jax.random.split(key, 3)
    params, chunk_ends, seq, seq_pad = init_params(kp, cfg)
    x = jax.random.normal(kx, (2, cfg['in_chans'], cfg['img'], cfg['img']),
                          jnp.float32)
    target = jax.random.randint(kt, (2,), 0, cfg['num_classes'])

    fwd = jax.jit(partial(svp7plus_forward, cfg=cfg, chunk_ends=chunk_ends,
                          seq=seq, seq_pad=seq_pad))
    total_loss, ce_loss, fa_loss = fwd(params, x, target)
    jax.block_until_ready((total_loss, ce_loss, fa_loss))
    print("KERNEL_OK")
</pallas_src>

<mosaic_0001>
module attributes {stable_mosaic.version = 11 : i64} {
  func.func @_embed_kernel(%arg0: memref<8x768xf32, #tpu.memory_space<vmem>>, %arg1: memref<768x32xbf16, #tpu.memory_space<vmem>>, %arg2: memref<1x32xf32, #tpu.memory_space<vmem>>, %arg3: memref<1x32xf32, #tpu.memory_space<vmem>>, %arg4: memref<8x32xf32, #tpu.memory_space<vmem>>, %arg5: memref<16x32xf32, #tpu.memory_space<vmem>>) attributes {dimension_semantics = [], scalar_prefetch = 0 : i64, scratch_operands = 0 : i64, tpu.core_type = #tpu.core_type<tc>} {
    %c0 = arith.constant 0 : index
    %c0_0 = arith.constant 0 : index
    %0 = vector.load %arg0[%c0, %c0_0] : memref<8x768xf32, #tpu.memory_space<vmem>>, vector<8x768xf32>
    %1 = arith.truncf %0 : vector<8x768xf32> to vector<8x768xbf16>
    %c0_1 = arith.constant 0 : index
    %c0_2 = arith.constant 0 : index
    %2 = vector.load %arg1[%c0_1, %c0_2] : memref<768x32xbf16, #tpu.memory_space<vmem>>, vector<768x32xbf16>
    %cst = arith.constant dense<0.000000e+00> : vector<8x32xf32>
    %3 = tpu.matmul %1, %2, %cst {dimension_numbers = #tpu.dot_dimension_numbers<[1], [0], [0], [1], [0, 0, 1, 1], [], []>} : vector<8x768xbf16>, vector<768x32xbf16>, vector<8x32xf32> -> vector<8x32xf32>
    %c0_3 = arith.constant 0 : index
    %c0_4 = arith.constant 0 : index
    %4 = vector.load %arg2[%c0_3, %c0_4] : memref<1x32xf32, #tpu.memory_space<vmem>>, vector<1x32xf32>
    %5 = vector.broadcast %4 : vector<1x32xf32> to vector<8x32xf32>
    %6 = arith.addf %3, %5 : vector<8x32xf32>
    %c0_5 = arith.constant 0 : index
    %c0_6 = arith.constant 0 : index
    %7 = vector.load %arg4[%c0_5, %c0_6] : memref<8x32xf32, #tpu.memory_space<vmem>>, vector<8x32xf32>
    %c0_7 = arith.constant 0 : index
    %c0_8 = arith.constant 0 : index
    %8 = vector.load %arg3[%c0_7, %c0_8] : memref<1x32xf32, #tpu.memory_space<vmem>>, vector<1x32xf32>
    %9 = vector.extract_strided_slice %6 {offsets = [0, 0], sizes = [4, 32], strides = [1, 1]} : vector<8x32xf32> to vector<4x32xf32>
    %cst_9 = arith.constant 0.000000e+00 : f32
    %10 = vector.broadcast %cst_9 : f32 to vector<3x32xf32>
    %11 = tpu.concatenate %8, %9, %10 in 0 : vector<1x32xf32>, vector<4x32xf32>, vector<3x32xf32> -> vector<8x32xf32>
    %12 = arith.addf %11, %7 : vector<8x32xf32>
    %c0_10 = arith.constant 0 : index
    %c0_11 = arith.constant 0 : index
    %13 = vector.load %arg5[%c0_10, %c0_11] : memref<16x32xf32, #tpu.memory_space<vmem>>, vector<8x32xf32>
    tpu.vector_store %arg5[%c0_10, %c0_11], %12 {strides = array<i32>} : memref<16x32xf32, #tpu.memory_space<vmem>>, vector<8x32xf32>,
    %14 = vector.extract_strided_slice %6 {offsets = [4, 0], sizes = [4, 32], strides = [1, 1]} : vector<8x32xf32> to vector<4x32xf32>
    %cst_12 = arith.constant 0.000000e+00 : f32
    %15 = vector.broadcast %cst_12 : f32 to vector<3x32xf32>
    %16 = tpu.concatenate %8, %14, %15 in 0 : vector<1x32xf32>, vector<4x32xf32>, vector<3x32xf32> -> vector<8x32xf32>
    %17 = arith.addf %16, %7 : vector<8x32xf32>
    %c8 = arith.constant 8 : index
    %c0_13 = arith.constant 0 : index
    %18 = vector.load %arg5[%c8, %c0_13] : memref<16x32xf32, #tpu.memory_space<vmem>>, vector<8x32xf32>
    tpu.vector_store %arg5[%c8, %c0_13], %17 {strides = array<i32>} : memref<16x32xf32, #tpu.memory_space<vmem>>, vector<8x32xf32>,
    return
  }
}

module attributes {stable_mosaic.version = 11 : i64} {
  func.func @_backbone_kernel(%arg0: i32, %arg1: memref<16x32xf32, #tpu.memory_space<vmem>>, %arg2: memref<1x1x32xf32, #tpu.memory_space<vmem>>, %arg3: memref<1x1x32xf32, #tpu.memory_space<vmem>>, %arg4: memref<1x32x96xbf16, #tpu.memory_space<vmem>>, %arg5: memref<1x1x96xf32, #tpu.memory_space<vmem>>, %arg6: memref<1x32x32xbf16, #tpu.memory_space<vmem>>, %arg7: memref<1x1x32xf32, #tpu.memory_space<vmem>>, %arg8: memref<1x1x32xf32, #tpu.memory_space<vmem>>, %arg9: memref<1x1x32xf32, #tpu.memory_space<vmem>>, %arg10: memref<1x32x128xbf16, #tpu.memory_space<vmem>>, %arg11: memref<1x1x128xf32, #tpu.memory_space<vmem>>, %arg12: memref<1x128x32xbf16, #tpu.memory_space<vmem>>, %arg13: memref<1x1x32xf32, #tpu.memory_space<vmem>>, %arg14: memref<1x2x32xf32, #tpu.memory_space<vmem>>, %arg15: memref<16x32xf32, #tpu.memory_space<vmem>>) attributes {dimension_semantics = [#tpu.dimension_semantics<arbitrary>], iteration_bounds = array<i64: 4>, scalar_prefetch = 0 : i64, scratch_operands = 1 : i64, tpu.core_type = #tpu.core_type<tc>, window_params = [{pipeline_mode = #tpu.pipeline_mode<synchronous>, transform_indices = @transform_0, window_bounds = array<i64: 16, 32>}, {transform_indices = @transform_1, window_bounds = array<i64: 1, 1, 32>}, {transform_indices = @transform_2, window_bounds = array<i64: 1, 1, 32>}, {transform_indices = @transform_3, window_bounds = array<i64: 1, 32, 96>}, {transform_indices = @transform_4, window_bounds = array<i64: 1, 1, 96>}, {transform_indices = @transform_5, window_bounds = array<i64: 1, 32, 32>}, {transform_indices = @transform_6, window_bounds = array<i64: 1, 1, 32>}, {transform_indices = @transform_7, window_bounds = array<i64: 1, 1, 32>}, {transform_indices = @transform_8, window_bounds = array<i64: 1, 1, 32>}, {transform_indices = @transform_9, window_bounds = array<i64: 1, 32, 128>}, {transform_indices = @transform_10, window_bounds = array<i64: 1, 1, 128>}, {transform_indices = @transform_11, window_bounds = array<i64: 1, 128, 32>}, {transform_indices = @transform_12, window_bounds = array<i64: 1, 1, 32>}, {transform_indices = @transform_13, window_bounds = array<i64: 1, 2, 32>}]} {
    %c0_i32 = arith.constant 0 : i32
    %0 = arith.cmpi eq, %arg0, %c0_i32 : i32
    %1 = arith.extui %0 : i1 to i32
    %c0_i32_0 = arith.constant 0 : i32
    %2 = arith.cmpi ne, %1, %c0_i32_0 : i32
    scf.if %2 {
      %c0_90 = arith.constant 0 : index
      %c0_91 = arith.constant 0 : index
      %230 = vector.load %arg1[%c0_90, %c0_91] : memref<16x32xf32, #tpu.memory_space<vmem>>, vector<16x32xf32>
      %c0_92 = arith.constant 0 : index
      %c0_93 = arith.constant 0 : index
      %231 = vector.load %arg15[%c0_92, %c0_93] : memref<16x32xf32, #tpu.memory_space<vmem>>, vector<16x32xf32>
      tpu.vector_store %arg15[%c0_92, %c0_93], %230 {strides = array<i32>} : memref<16x32xf32, #tpu.memory_space<vmem>>, vector<16x32xf32>,
    } else {
    }
    %c0 = arith.constant 0 : index
    %c0_1 = arith.constant 0 : index
    %3 = vector.load %arg15[%c0, %c0_1] : memref<16x32xf32, #tpu.memory_space<vmem>>, vector<16x32xf32>
    %c0_2 = arith.constant 0 : index
    %c0_3 = arith.constant 0 : index
    %c0_4 = arith.constant 0 : index
    %4 = vector.load %arg2[%c0_2, %c0_3, %c0_4] : memref<1x1x32xf32, #tpu.memory_space<vmem>>, vector<1x1x32xf32>
    %5 = vector.shape_cast %4 : vector<1x1x32xf32> to vector<1x32xf32>
    %c0_5 = arith.constant 0 : index
    %c0_6 = arith.constant 0 : index
    %c0_7 = arith.constant 0 : index
    %6 = vector.load %arg3[%c0_5, %c0_6, %c0_7] : memref<1x1x32xf32, #tpu.memory_space<vmem>>, vector<1x1x32xf32>
    %7 = vector.shape_cast %6 : vector<1x1x32xf32> to vector<1x32xf32>
    %cst = arith.constant dense<0.000000e+00> : vector<16xf32>
    %8 = vector.multi_reduction <add>, %3, %cst [1] : vector<16x32xf32> to vector<16xf32>
    %9 = vector.shape_cast %8 : vector<16xf32> to vector<16x1xf32>
    %cst_8 = arith.constant 3.200000e+01 : f32
    %10 = vector.broadcast %cst_8 : f32 to vector<16x1xf32>
    %11 = arith.divf %9, %10 : vector<16x1xf32>
    %12 = vector.broadcast %11 : vector<16x1xf32> to vector<16x32xf32>
    %13 = arith.subf %3, %12 : vector<16x32xf32>
    %14 = arith.mulf %13, %13 : vector<16x32xf32>
    %cst_9 = arith.constant dense<0.000000e+00> : vector<16xf32>
    %15 = vector.multi_reduction <add>, %14, %cst_9 [1] : vector<16x32xf32> to vector<16xf32>
    %16 = vector.shape_cast %15 : vector<16xf32> to vector<16x1xf32>
    %cst_10 = arith.constant 3.200000e+01 : f32
    %17 = vector.broadcast %cst_10 : f32 to vector<16x1xf32>
    %18 = arith.divf %16, %17 : vector<16x1xf32>
    %19 = vector.broadcast %11 : vector<16x1xf32> to vector<16x32xf32>
    %20 = arith.subf %3, %19 : vector<16x32xf32>
    %cst_11 = arith.constant 9.99999997E-7 : f32
    %21 = vector.broadcast %cst_11 : f32 to vector<16x1xf32>
    %22 = arith.addf %18, %21 : vector<16x1xf32>
    %23 = math.rsqrt %22 : vector<16x1xf32>
    %24 = vector.broadcast %23 : vector<16x1xf32> to vector<16x32xf32>
    %25 = arith.mulf %20, %24 : vector<16x32xf32>
    %26 = vector.broadcast %5 : vector<1x32xf32> to vector<16x32xf32>
    %27 = arith.mulf %25, %26 : vector<16x32xf32>
    %28 = vector.broadcast %7 : vector<1x32xf32> to vector<16x32xf32>
    %29 = arith.addf %27, %28 : vector<16x32xf32>
    %30 = arith.truncf %29 : vector<16x32xf32> to vector<16x32xbf16>
    %c0_12 = arith.constant 0 : index
    %c0_13 = arith.constant 0 : index
    %c0_14 = arith.constant 0 : index
    %31 = vector.load %arg4[%c0_12, %c0_13, %c0_14] : memref<1x32x96xbf16, #tpu.memory_space<vmem>>, vector<1x32x96xbf16>
    %32 = vector.shape_cast %31 : vector<1x32x96xbf16> to vector<32x96xbf16>
    %cst_15 = arith.constant dense<0.000000e+00> : vector<16x96xf32>
    %33 = tpu.matmul %30, %32, %cst_15 {dimension_numbers = #tpu.dot_dimension_numbers<[1], [0], [0], [1], [0, 0, 1, 1], [], []>} : vector<16x32xbf16>, vector<32x96xbf16>, vector<16x96xf32> -> vector<16x96xf32>
    %c0_16 = arith.constant 0 : index
    %c0_17 = arith.constant 0 : index
    %c0_18 = arith.constant 0 : index
    %34 = vector.load %arg5[%c0_16, %c0_17, %c0_18] : memref<1x1x96xf32, #tpu.memory_space<vmem>>, vector<1x1x96xf32>
    %35 = vector.shape_cast %34 : vector<1x1x96xf32> to vector<1x96xf32>
    %36 = vector.broadcast %35 : vector<1x96xf32> to vector<16x96xf32>
    %37 = arith.addf %33, %36 : vector<16x96xf32>
    %38 = vector.extract_strided_slice %37 {offsets = [0, 0], sizes = [16, 32], strides = [1, 1]} : vector<16x96xf32> to vector<16x32xf32>
    %39 = vector.extract_strided_slice %37 {offsets = [0, 32], sizes = [16, 32], strides = [1, 1]} : vector<16x96xf32> to vector<16x32xf32>
    %40 = vector.extract_strided_slice %37 {offsets = [0, 64], sizes = [16, 32], strides = [1, 1]} : vector<16x96xf32> to vector<16x32xf32>
    %41 = tpu.iota {dimensions = array<i32: 1>} : vector<1x8xi32>
    %c5_i32 = arith.constant 5 : i32
    %42 = vector.broadcast %c5_i32 : i32 to vector<1x8xi32>
    %43 = arith.cmpi slt, %41, %42 : vector<1x8xi32>
    %cst_19 = arith.constant 0.000000e+00 : f32
    %cst_20 = arith.constant -1.000000e+30 : f32
    %44 = vector.broadcast %cst_19 : f32 to vector<1x8xf32>
    %45 = vector.broadcast %cst_20 : f32 to vector<1x8xf32>
    %46 = arith.select %43, %44, %45 : vector<1x8xi1>, vector<1x8xf32>
    %c0_21 = arith.constant 0 : index
    %c0_22 = arith.constant 0 : index
    %c0_23 = arith.constant 0 : index
    %47 = vector.load %arg6[%c0_21, %c0_22, %c0_23] : memref<1x32x32xbf16, #tpu.memory_space<vmem>>, vector<1x32x32xbf16>
    %48 = vector.shape_cast %47 : vector<1x32x32xbf16> to vector<32x32xbf16>
    %c0_24 = arith.constant 0 : index
    %c0_25 = arith.constant 0 : index
    %c0_26 = arith.constant 0 : index
    %49 = vector.load %arg7[%c0_24, %c0_25, %c0_26] : memref<1x1x32xf32, #tpu.memory_space<vmem>>, vector<1x1x32xf32>
    %50 = vector.shape_cast %49 : vector<1x1x32xf32> to vector<1x32xf32>
    %51 = vector.extract_strided_slice %38 {offsets = [0, 0], sizes = [8, 16], strides = [1, 1]} : vector<16x32xf32> to vector<8x16xf32>
    %52 = arith.truncf %51 : vector<8x16xf32> to vector<8x16xbf16>
    %53 = vector.extract_strided_slice %39 {offsets = [0, 0], sizes = [8, 16], strides = [1, 1]} : vector<16x32xf32> to vector<8x16xf32>
    %54 = arith.truncf %53 : vector<8x16xf32> to vector<8x16xbf16>
    %55 = vector.extract_strided_slice %40 {offsets = [0, 0], sizes = [8, 16], strides = [1, 1]} : vector<16x32xf32> to vector<8x16xf32>
    %56 = arith.truncf %55 : vector<8x16xf32> to vector<8x16xbf16>
    %cst_27 = arith.constant dense<0.000000e+00> : vector<8x8xf32>
    %57 = tpu.matmul %52, %54, %cst_27 {dimension_numbers = #tpu.dot_dimension_numbers<[1], [1], [0], [0], [0, 0, 1, 0], [], []>} : vector<8x16xbf16>, vector<8x16xbf16>, vector<8x8xf32> -> vector<8x8xf32>
    %cst_28 = arith.constant 2.500000e-01 : f32
    %58 = vector.broadcast %cst_28 : f32 to vector<8x8xf32>
    %59 = arith.mulf %57, %58 : vector<8x8xf32>
    %60 = vector.broadcast %46 : vector<1x8xf32> to vector<8x8xf32>
    %61 = arith.addf %59, %60 : vector<8x8xf32>
    %cst_29 = arith.constant dense<0xFF800000> : vector<8xf32>
    %62 = vector.multi_reduction <maximumf>, %61, %cst_29 [1] : vector<8x8xf32> to vector<8xf32>
    %63 = vector.shape_cast %62 : vector<8xf32> to vector<8x1xf32>
    %64 = vector.broadcast %63 : vector<8x1xf32> to vector<8x8xf32>
    %65 = arith.subf %61, %64 : vector<8x8xf32>
    %66 = math.exp %65 : vector<8x8xf32>
    %cst_30 = arith.constant dense<0.000000e+00> : vector<8xf32>
    %67 = vector.multi_reduction <add>, %66, %cst_30 [1] : vector<8x8xf32> to vector<8xf32>
    %68 = vector.shape_cast %67 : vector<8xf32> to vector<8x1xf32>
    %69 = tpu.reciprocal %68 {approx = true} : vector<8x1xf32> -> vector<8x1xf32>
    %70 = vector.broadcast %69 : vector<8x1xf32> to vector<8x8xf32>
    %71 = arith.mulf %66, %70 : vector<8x8xf32>
    %72 = arith.truncf %71 : vector<8x8xf32> to vector<8x8xbf16>
    %cst_31 = arith.constant dense<0.000000e+00> : vector<8x16xf32>
    %73 = tpu.matmul %72, %56, %cst_31 {dimension_numbers = #tpu.dot_dimension_numbers<[1], [0], [0], [1], [0, 0, 1, 1], [], []>} : vector<8x8xbf16>, vector<8x16xbf16>, vector<8x16xf32> -> vector<8x16xf32>
    %74 = arith.truncf %73 : vector<8x16xf32> to vector<8x16xbf16>
    %75 = vector.extract_strided_slice %48 {offsets = [0, 0], sizes = [16, 32], strides = [1, 1]} : vector<32x32xbf16> to vector<16x32xbf16>
    %cst_32 = arith.constant dense<0.000000e+00> : vector<8x32xf32>
    %76 = tpu.matmul %74, %75, %cst_32 {dimension_numbers = #tpu.dot_dimension_numbers<[1], [0], [0], [1], [0, 0, 1, 1], [], []>} : vector<8x16xbf16>, vector<16x32xbf16>, vector<8x32xf32> -> vector<8x32xf32>
    %77 = vector.extract_strided_slice %38 {offsets = [0, 16], sizes = [8, 16], strides = [1, 1]} : vector<16x32xf32> to vector<8x16xf32>
    %78 = arith.truncf %77 : vector<8x16xf32> to vector<8x16xbf16>
    %79 = vector.extract_strided_slice %39 {offsets = [0, 16], sizes = [8, 16], strides = [1, 1]} : vector<16x32xf32> to vector<8x16xf32>
    %80 = arith.truncf %79 : vector<8x16xf32> to vector<8x16xbf16>
    %81 = vector.extract_strided_slice %40 {offsets = [0, 16], sizes = [8, 16], strides = [1, 1]} : vector<16x32xf32> to vector<8x16xf32>
    %82 = arith.truncf %81 : vector<8x16xf32> to vector<8x16xbf16>
    %cst_33 = arith.constant dense<0.000000e+00> : vector<8x8xf32>
    %83 = tpu.matmul %78, %80, %cst_33 {dimension_numbers = #tpu.dot_dimension_numbers<[1], [1], [0], [0], [0, 0, 1, 0], [], []>} : vector<8x16xbf16>, vector<8x16xbf16>, vector<8x8xf32> -> vector<8x8xf32>
    %cst_34 = arith.constant 2.500000e-01 : f32
    %84 = vector.broadcast %cst_34 : f32 to vector<8x8xf32>
    %85 = arith.mulf %83, %84 : vector<8x8xf32>
    %86 = vector.broadcast %46 : vector<1x8xf32> to vector<8x8xf32>
    %87 = arith.addf %85, %86 : vector<8x8xf32>
    %cst_35 = arith.constant dense<0xFF800000> : vector<8xf32>
    %88 = vector.multi_reduction <maximumf>, %87, %cst_35 [1] : vector<8x8xf32> to vector<8xf32>
    %89 = vector.shape_cast %88 : vector<8xf32> to vector<8x1xf32>
    %90 = vector.broadcast %89 : vector<8x1xf32> to vector<8x8xf32>
    %91 = arith.subf %87, %90 : vector<8x8xf32>
    %92 = math.exp %91 : vector<8x8xf32>
    %cst_36 = arith.constant dense<0.000000e+00> : vector<8xf32>
    %93 = vector.multi_reduction <add>, %92, %cst_36 [1] : vector<8x8xf32> to vector<8xf32>
    %94 = vector.shape_cast %93 : vector<8xf32> to vector<8x1xf32>
    %95 = tpu.reciprocal %94 {approx = true} : vector<8x1xf32> -> vector<8x1xf32>
    %96 = vector.broadcast %95 : vector<8x1xf32> to vector<8x8xf32>
    %97 = arith.mulf %92, %96 : vector<8x8xf32>
    %98 = arith.truncf %97 : vector<8x8xf32> to vector<8x8xbf16>
    %cst_37 = arith.constant dense<0.000000e+00> : vector<8x16xf32>
    %99 = tpu.matmul %98, %82, %cst_37 {dimension_numbers = #tpu.dot_dimension_numbers<[1], [0], [0], [1], [0, 0, 1, 1], [], []>} : vector<8x8xbf16>, vector<8x16xbf16>, vector<8x16xf32> -> vector<8x16xf32>
    %100 = arith.truncf %99 : vector<8x16xf32> to vector<8x16xbf16>
    %101 = vector.extract_strided_slice %48 {offsets = [16, 0], sizes = [16, 32], strides = [1, 1]} : vector<32x32xbf16> to vector<16x32xbf16>
    %cst_38 = arith.constant dense<0.000000e+00> : vector<8x32xf32>
    %102 = tpu.matmul %100, %101, %cst_38 {dimension_numbers = #tpu.dot_dimension_numbers<[1], [0], [0], [1], [0, 0, 1, 1], [], []>} : vector<8x16xbf16>, vector<16x32xbf16>, vector<8x32xf32> -> vector<8x32xf32>
    %103 = arith.addf %76, %102 : vector<8x32xf32>
    %104 = vector.extract_strided_slice %3 {offsets = [0, 0], sizes = [8, 32], strides = [1, 1]} : vector<16x32xf32> to vector<8x32xf32>
    %105 = arith.addf %104, %103 : vector<8x32xf32>
    %106 = vector.broadcast %50 : vector<1x32xf32> to vector<8x32xf32>
    %107 = arith.addf %105, %106 : vector<8x32xf32>
    %c0_39 = arith.constant 0 : index
    %c0_40 = arith.constant 0 : index
    %108 = vector.load %arg15[%c0_39, %c0_40] : memref<16x32xf32, #tpu.memory_space<vmem>>, vector<8x32xf32>
    tpu.vector_store %arg15[%c0_39, %c0_40], %107 {strides = array<i32>} : memref<16x32xf32, #tpu.memory_space<vmem>>, vector<8x32xf32>,
    %109 = vector.extract_strided_slice %38 {offsets = [8, 0], sizes = [8, 16], strides = [1, 1]} : vector<16x32xf32> to vector<8x16xf32>
    %110 = arith.truncf %109 : vector<8x16xf32> to vector<8x16xbf16>
    %111 = vector.extract_strided_slice %39 {offsets = [8, 0], sizes = [8, 16], strides = [1, 1]} : vector<16x32xf32> to vector<8x16xf32>
    %112 = arith.truncf %111 : vector<8x16xf32> to vector<8x16xbf16>
    %113 = vector.extract_strided_slice %40 {offsets = [8, 0], sizes = [8, 16], strides = [1, 1]} : vector<16x32xf32> to vector<8x16xf32>
    %114 = arith.truncf %113 : vector<8x16xf32> to vector<8x16xbf16>
    %cst_41 = arith.constant dense<0.000000e+00> : vector<8x8xf32>
    %115 = tpu.matmul %110, %112, %cst_41 {dimension_numbers = #tpu.dot_dimension_numbers<[1], [1], [0], [0], [0, 0, 1, 0], [], []>} : vector<8x16xbf16>, vector<8x16xbf16>, vector<8x8xf32> -> vector<8x8xf32>
    %cst_42 = arith.constant 2.500000e-01 : f32
    %116 = vector.broadcast %cst_42 : f32 to vector<8x8xf32>
    %117 = arith.mulf %115, %116 : vector<8x8xf32>
    %118 = vector.broadcast %46 : vector<1x8xf32> to vector<8x8xf32>
    %119 = arith.addf %117, %118 : vector<8x8xf32>
    %cst_43 = arith.constant dense<0xFF800000> : vector<8xf32>
    %120 = vector.multi_reduction <maximumf>, %119, %cst_43 [1] : vector<8x8xf32> to vector<8xf32>
    %121 = vector.shape_cast %120 : vector<8xf32> to vector<8x1xf32>
    %122 = vector.broadcast %121 : vector<8x1xf32> to vector<8x8xf32>
    %123 = arith.subf %119, %122 : vector<8x8xf32>
    %124 = math.exp %123 : vector<8x8xf32>
    %cst_44 = arith.constant dense<0.000000e+00> : vector<8xf32>
    %125 = vector.multi_reduction <add>, %124, %cst_44 [1] : vector<8x8xf32> to vector<8xf32>
    %126 = vector.shape_cast %125 : vector<8xf32> to vector<8x1xf32>
    %127 = tpu.reciprocal %126 {approx = true} : vector<8x1xf32> -> vector<8x1xf32>
    %128 = vector.broadcast %127 : vector<8x1xf32> to vector<8x8xf32>
    %129 = arith.mulf %124, %128 : vector<8x8xf32>
    %130 = arith.truncf %129 : vector<8x8xf32> to vector<8x8xbf16>
    %cst_45 = arith.constant dense<0.000000e+00> : vector<8x16xf32>
    %131 = tpu.matmul %130, %114, %cst_45 {dimension_numbers = #tpu.dot_dimension_numbers<[1], [0], [0], [1], [0, 0, 1, 1], [], []>} : vector<8x8xbf16>, vector<8x16xbf16>, vector<8x16xf32> -> vector<8x16xf32>
    %132 = arith.truncf %131 : vector<8x16xf32> to vector<8x16xbf16>
    %133 = vector.extract_strided_slice %48 {offsets = [0, 0], sizes = [16, 32], strides = [1, 1]} : vector<32x32xbf16> to vector<16x32xbf16>
    %cst_46 = arith.constant dense<0.000000e+00> : vector<8x32xf32>
    %134 = tpu.matmul %132, %133, %cst_46 {dimension_numbers = #tpu.dot_dimension_numbers<[1], [0], [0], [1], [0, 0, 1, 1], [], []>} : vector<8x16xbf16>, vector<16x32xbf16>, vector<8x32xf32> -> vector<8x32xf32>
    %135 = vector.extract_strided_slice %38 {offsets = [8, 16], sizes = [8, 16], strides = [1, 1]} : vector<16x32xf32> to vector<8x16xf32>
    %136 = arith.truncf %135 : vector<8x16xf32> to vector<8x16xbf16>
    %137 = vector.extract_strided_slice %39 {offsets = [8, 16], sizes = [8, 16], strides = [1, 1]} : vector<16x32xf32> to vector<8x16xf32>
    %138 = arith.truncf %137 : vector<8x16xf32> to vector<8x16xbf16>
    %139 = vector.extract_strided_slice %40 {offsets = [8, 16], sizes = [8, 16], strides = [1, 1]} : vector<16x32xf32> to vector<8x16xf32>
    %140 = arith.truncf %139 : vector<8x16xf32> to vector<8x16xbf16>
    %cst_47 = arith.constant dense<0.000000e+00> : vector<8x8xf32>
    %141 = tpu.matmul %136, %138, %cst_47 {dimension_numbers = #tpu.dot_dimension_numbers<[1], [1], [0], [0], [0, 0, 1, 0], [], []>} : vector<8x16xbf16>, vector<8x16xbf16>, vector<8x8xf32> -> vector<8x8xf32>
    %cst_48 = arith.constant 2.500000e-01 : f32
    %142 = vector.broadcast %cst_48 : f32 to vector<8x8xf32>
    %143 = arith.mulf %141, %142 : vector<8x8xf32>
    %144 = vector.broadcast %46 : vector<1x8xf32> to vector<8x8xf32>
    %145 = arith.addf %143, %144 : vector<8x8xf32>
    %cst_49 = arith.constant dense<0xFF800000> : vector<8xf32>
    %146 = vector.multi_reduction <maximumf>, %145, %cst_49 [1] : vector<8x8xf32> to vector<8xf32>
    %147 = vector.shape_cast %146 : vector<8xf32> to vector<8x1xf32>
    %148 = vector.broadcast %147 : vector<8x1xf32> to vector<8x8xf32>
    %149 = arith.subf %145, %148 : vector<8x8xf32>
    %150 = math.exp %149 : vector<8x8xf32>
    %cst_50 = arith.constant dense<0.000000e+00> : vector<8xf32>
    %151 = vector.multi_reduction <add>, %150, %cst_50 [1] : vector<8x8xf32> to vector<8xf32>
    %152 = vector.shape_cast %151 : vector<8xf32> to vector<8x1xf32>
    %153 = tpu.reciprocal %152 {approx = true} : vector<8x1xf32> -> vector<8x1xf32>
    %154 = vector.broadcast %153 : vector<8x1xf32> to vector<8x8xf32>
    %155 = arith.mulf %150, %154 : vector<8x8xf32>
    %156 = arith.truncf %155 : vector<8x8xf32> to vector<8x8xbf16>
    %cst_51 = arith.constant dense<0.000000e+00> : vector<8x16xf32>
    %157 = tpu.matmul %156, %140, %cst_51 {dimension_numbers = #tpu.dot_dimension_numbers<[1], [0], [0], [1], [0, 0, 1, 1], [], []>} : vector<8x8xbf16>, vector<8x16xbf16>, vector<8x16xf32> -> vector<8x16xf32>
    %158 = arith.truncf %157 : vector<8x16xf32> to vector<8x16xbf16>
    %159 = vector.extract_strided_slice %48 {offsets = [16, 0], sizes = [16, 32], strides = [1, 1]} : vector<32x32xbf16> to vector<16x32xbf16>
    %cst_52 = arith.constant dense<0.000000e+00> : vector<8x32xf32>
    %160 = tpu.matmul %158, %159, %cst_52 {dimension_numbers = #tpu.dot_dimension_numbers<[1], [0], [0], [1], [0, 0, 1, 1], [], []>} : vector<8x16xbf16>, vector<16x32xbf16>, vector<8x32xf32> -> vector<8x32xf32>
    %161 = arith.addf %134, %160 : vector<8x32xf32>
    %162 = vector.extract_strided_slice %3 {offsets = [8, 0], sizes = [8, 32], strides = [1, 1]} : vector<16x32xf32> to vector<8x32xf32>
    %163 = arith.addf %162, %161 : vector<8x32xf32>
    %164 = vector.broadcast %50 : vector<1x32xf32> to vector<8x32xf32>
    %165 = arith.addf %163, %164 : vector<8x32xf32>
    %c8 = arith.constant 8 : index
    %c0_53 = arith.constant 0 : index
    %166 = vector.load %arg15[%c8, %c0_53] : memref<16x32xf32, #tpu.memory_space<vmem>>, vector<8x32xf32>
    tpu.vector_store %arg15[%c8, %c0_53], %165 {strides = array<i32>} : memref<16x32xf32, #tpu.memory_space<vmem>>, vector<8x32xf32>,
    %c0_54 = arith.constant 0 : index
    %c0_55 = arith.constant 0 : index
    %167 = vector.load %arg15[%c0_54, %c0_55] : memref<16x32xf32, #tpu.memory_space<vmem>>, vector<16x32xf32>
    %c0_56 = arith.constant 0 : index
    %c0_57 = arith.constant 0 : index
    %c0_58 = arith.constant 0 : index
    %168 = vector.load %arg8[%c0_56, %c0_57, %c0_58] : memref<1x1x32xf32, #tpu.memory_space<vmem>>, vector<1x1x32xf32>
    %169 = vector.shape_cast %168 : vector<1x1x32xf32> to vector<1x32xf32>
    %c0_59 = arith.constant 0 : index
    %c0_60 = arith.constant 0 : index
    %c0_61 = arith.constant 0 : index
    %170 = vector.load %arg9[%c0_59, %c0_60, %c0_61] : memref<1x1x32xf32, #tpu.memory_space<vmem>>, vector<1x1x32xf32>
    %171 = vector.shape_cast %170 : vector<1x1x32xf32> to vector<1x32xf32>
    %cst_62 = arith.constant dense<0.000000e+00> : vector<16xf32>
    %172 = vector.multi_reduction <add>, %167, %cst_62 [1] : vector<16x32xf32> to vector<16xf32>
    %173 = vector.shape_cast %172 : vector<16xf32> to vector<16x1xf32>
    %cst_63 = arith.constant 3.200000e+01 : f32
    %174 = vector.broadcast %cst_63 : f32 to vector<16x1xf32>
    %175 = arith.divf %173, %174 : vector<16x1xf32>
    %176 = vector.broadcast %175 : vector<16x1xf32> to vector<16x32xf32>
    %177 = arith.subf %167, %176 : vector<16x32xf32>
    %178 = arith.mulf %177, %177 : vector<16x32xf32>
    %cst_64 = arith.constant dense<0.000000e+00> : vector<16xf32>
    %179 = vector.multi_reduction <add>, %178, %cst_64 [1] : vector<16x32xf32> to vector<16xf32>
    %180 = vector.shape_cast %179 : vector<16xf32> to vector<16x1xf32>
    %cst_65 = arith.constant 3.200000e+01 : f32
    %181 = vector.broadcast %cst_65 : f32 to vector<16x1xf32>
    %182 = arith.divf %180, %181 : vector<16x1xf32>
    %183 = vector.broadcast %175 : vector<16x1xf32> to vector<16x32xf32>
    %184 = arith.subf %167, %183 : vector<16x32xf32>
    %cst_66 = arith.constant 9.99999997E-7 : f32
    %185 = vector.broadcast %cst_66 : f32 to vector<16x1xf32>
    %186 = arith.addf %182, %185 : vector<16x1xf32>
    %187 = math.rsqrt %186 : vector<16x1xf32>
    %188 = vector.broadcast %187 : vector<16x1xf32> to vector<16x32xf32>
    %189 = arith.mulf %184, %188 : vector<16x32xf32>
    %190 = vector.broadcast %169 : vector<1x32xf32> to vector<16x32xf32>
    %191 = arith.mulf %189, %190 : vector<16x32xf32>
    %192 = vector.broadcast %171 : vector<1x32xf32> to vector<16x32xf32>
    %193 = arith.addf %191, %192 : vector<16x32xf32>
    %194 = arith.truncf %193 : vector<16x32xf32> to vector<16x32xbf16>
    %c0_67 = arith.constant 0 : index
    %c0_68 = arith.constant 0 : index
    %c0_69 = arith.constant 0 : index
    %195 = vector.load %arg10[%c0_67, %c0_68, %c0_69] : memref<1x32x128xbf16, #tpu.memory_space<vmem>>, vector<1x32x128xbf16>
    %196 = vector.shape_cast %195 : vector<1x32x128xbf16> to vector<32x128xbf16>
    %cst_70 = arith.constant dense<0.000000e+00> : vector<16x128xf32>
    %197 = tpu.matmul %194, %196, %cst_70 {dimension_numbers = #tpu.dot_dimension_numbers<[1], [0], [0], [1], [0, 0, 1, 1], [], []>} : vector<16x32xbf16>, vector<32x128xbf16>, vector<16x128xf32> -> vector<16x128xf32>
    %c0_71 = arith.constant 0 : index
    %c0_72 = arith.constant 0 : index
    %c0_73 = arith.constant 0 : index
    %198 = vector.load %arg11[%c0_71, %c0_72, %c0_73] : memref<1x1x128xf32, #tpu.memory_space<vmem>>, vector<1x1x128xf32>
    %199 = vector.shape_cast %198 : vector<1x1x128xf32> to vector<1x128xf32>
    %200 = vector.broadcast %199 : vector<1x128xf32> to vector<16x128xf32>
    %201 = arith.addf %197, %200 : vector<16x128xf32>
    %cst_74 = arith.constant 5.000000e-01 : f32
    %202 = vector.broadcast %cst_74 : f32 to vector<16x128xf32>
    %203 = arith.mulf %202, %201 : vector<16x128xf32>
    %cst_75 = arith.constant 4.471500e-02 : f32
    %204 = vector.broadcast %cst_75 : f32 to vector<16x128xf32>
    %205 = arith.mulf %204, %201 : vector<16x128xf32>
    %206 = arith.mulf %205, %201 : vector<16x128xf32>
    %207 = arith.mulf %206, %201 : vector<16x128xf32>
    %208 = arith.addf %201, %207 : vector<16x128xf32>
    %cst_76 = arith.constant 0.797884583 : f32
    %209 = vector.broadcast %cst_76 : f32 to vector<16x128xf32>
    %210 = arith.mulf %209, %208 : vector<16x128xf32>
    %211 = math.tanh %210 : vector<16x128xf32>
    %cst_77 = arith.constant 1.000000e+00 : f32
    %212 = vector.broadcast %cst_77 : f32 to vector<16x128xf32>
    %213 = arith.addf %212, %211 : vector<16x128xf32>
    %214 = arith.mulf %203, %213 : vector<16x128xf32>
    %215 = arith.truncf %214 : vector<16x128xf32> to vector<16x128xbf16>
    %c0_78 = arith.constant 0 : index
    %c0_79 = arith.constant 0 : index
    %c0_80 = arith.constant 0 : index
    %216 = vector.load %arg12[%c0_78, %c0_79, %c0_80] : memref<1x128x32xbf16, #tpu.memory_space<vmem>>, vector<1x128x32xbf16>
    %217 = vector.shape_cast %216 : vector<1x128x32xbf16> to vector<128x32xbf16>
    %cst_81 = arith.constant dense<0.000000e+00> : vector<16x32xf32>
    %218 = tpu.matmul %215, %217, %cst_81 {dimension_numbers = #tpu.dot_dimension_numbers<[1], [0], [0], [1], [0, 0, 1, 1], [], []>} : vector<16x128xbf16>, vector<128x32xbf16>, vector<16x32xf32> -> vector<16x32xf32>
    %c0_82 = arith.constant 0 : index
    %c0_83 = arith.constant 0 : index
    %c0_84 = arith.constant 0 : index
    %219 = vector.load %arg13[%c0_82, %c0_83, %c0_84] : memref<1x1x32xf32, #tpu.memory_space<vmem>>, vector<1x1x32xf32>
    %220 = vector.shape_cast %219 : vector<1x1x32xf32> to vector<1x32xf32>
    %221 = vector.broadcast %220 : vector<1x32xf32> to vector<16x32xf32>
    %222 = arith.addf %218, %221 : vector<16x32xf32>
    %223 = arith.addf %167, %222 : vector<16x32xf32>
    %c0_85 = arith.constant 0 : index
    %c0_86 = arith.constant 0 : index
    %224 = vector.load %arg15[%c0_85, %c0_86] : memref<16x32xf32, #tpu.memory_space<vmem>>, vector<16x32xf32>
    tpu.vector_store %arg15[%c0_85, %c0_86], %223 {strides = array<i32>} : memref<16x32xf32, #tpu.memory_space<vmem>>, vector<16x32xf32>,
    %225 = vector.extract_strided_slice %223 {offsets = [0, 0], sizes = [1, 32], strides = [1, 1]} : vector<16x32xf32> to vector<1x32xf32>
    %226 = vector.extract_strided_slice %223 {offsets = [8, 0], sizes = [1, 32], strides = [1, 1]} : vector<16x32xf32> to vector<1x32xf32>
    %227 = tpu.concatenate %225, %226 in 0 : vector<1x32xf32>, vector<1x32xf32> -> vector<2x32xf32>
    %228 = vector.shape_cast %227 : vector<2x32xf32> to vector<1x2x32xf32>
    %c0_87 = arith.constant 0 : index
    %c0_88 = arith.constant 0 : index
    %c0_89 = arith.constant 0 : index
    %229 = vector.load %arg14[%c0_87, %c0_88, %c0_89] : memref<1x2x32xf32, #tpu.memory_space<vmem>>, vector<1x2x32xf32>
    tpu.vector_store %arg14[%c0_87, %c0_88, %c0_89], %228 {strides = array<i32>} : memref<1x2x32xf32, #tpu.memory_space<vmem>>, vector<1x2x32xf32>,
    return
  }
  func.func @transform_0(%arg0: i32) -> (i32, i32) {
    %c0_i32 = arith.constant 0 : i32
    %c0_i32_0 = arith.constant 0 : i32
    %c0_i32_1 = arith.constant 0 : i32
    return %c0_i32, %c0_i32_0 : i32, i32
  }
  func.func @transform_1(%arg0: i32) -> (i32, i32, i32) {
    %c0_i32 = arith.constant 0 : i32
    %c0_i32_0 = arith.constant 0 : i32
    %c0_i32_1 = arith.constant 0 : i32
    return %arg0, %c0_i32, %c0_i32_0 : i32, i32, i32
  }
  func.func @transform_2(%arg0: i32) -> (i32, i32, i32) {
    %c0_i32 = arith.constant 0 : i32
    %c0_i32_0 = arith.constant 0 : i32
    %c0_i32_1 = arith.constant 0 : i32
    return %arg0, %c0_i32, %c0_i32_0 : i32, i32, i32
  }
  func.func @transform_3(%arg0: i32) -> (i32, i32, i32) {
    %c0_i32 = arith.constant 0 : i32
    %c0_i32_0 = arith.constant 0 : i32
    %c0_i32_1 = arith.constant 0 : i32
    return %arg0, %c0_i32, %c0_i32_0 : i32, i32, i32
  }
  func.func @transform_4(%arg0: i32) -> (i32, i32, i32) {
    %c0_i32 = arith.constant 0 : i32
    %c0_i32_0 = arith.constant 0 : i32
    %c0_i32_1 = arith.constant 0 : i32
    return %arg0, %c0_i32, %c0_i32_0 : i32, i32, i32
  }
  func.func @transform_5(%arg0: i32) -> (i32, i32, i32) {
    %c0_i32 = arith.constant 0 : i32
    %c0_i32_0 = arith.constant 0 : i32
    %c0_i32_1 = arith.constant 0 : i32
    return %arg0, %c0_i32, %c0_i32_0 : i32, i32, i32
  }
  func.func @transform_6(%arg0: i32) -> (i32, i32, i32) {
    %c0_i32 = arith.constant 0 : i32
    %c0_i32_0 = arith.constant 0 : i32
    %c0_i32_1 = arith.constant 0 : i32
    return %arg0, %c0_i32, %c0_i32_0 : i32, i32, i32
  }
  func.func @transform_7(%arg0: i32) -> (i32, i32, i32) {
    %c0_i32 = arith.constant 0 : i32
    %c0_i32_0 = arith.constant 0 : i32
    %c0_i32_1 = arith.constant 0 : i32
    return %arg0, %c0_i32, %c0_i32_0 : i32, i32, i32
  }
  func.func @transform_8(%arg0: i32) -> (i32, i32, i32) {
    %c0_i32 = arith.constant 0 : i32
    %c0_i32_0 = arith.constant 0 : i32
    %c0_i32_1 = arith.constant 0 : i32
    return %arg0, %c0_i32, %c0_i32_0 : i32, i32, i32
  }
  func.func @transform_9(%arg0: i32) -> (i32, i32, i32) {
    %c0_i32 = arith.constant 0 : i32
    %c0_i32_0 = arith.constant 0 : i32
    %c0_i32_1 = arith.constant 0 : i32
    return %arg0, %c0_i32, %c0_i32_0 : i32, i32, i32
  }
  func.func @transform_10(%arg0: i32) -> (i32, i32, i32) {
    %c0_i32 = arith.constant 0 : i32
    %c0_i32_0 = arith.constant 0 : i32
    %c0_i32_1 = arith.constant 0 : i32
    return %arg0, %c0_i32, %c0_i32_0 : i32, i32, i32
  }
  func.func @transform_11(%arg0: i32) -> (i32, i32, i32) {
    %c0_i32 = arith.constant 0 : i32
    %c0_i32_0 = arith.constant 0 : i32
    %c0_i32_1 = arith.constant 0 : i32
    return %arg0, %c0_i32, %c0_i32_0 : i32, i32, i32
  }
  func.func @transform_12(%arg0: i32) -> (i32, i32, i32) {
    %c0_i32 = arith.constant 0 : i32
    %c0_i32_0 = arith.constant 0 : i32
    %c0_i32_1 = arith.constant 0 : i32
    return %arg0, %c0_i32, %c0_i32_0 : i32, i32, i32
  }
  func.func @transform_13(%arg0: i32) -> (i32, i32, i32) {
    %c0_i32 = arith.constant 0 : i32
    %c0_i32_0 = arith.constant 0 : i32
    %c0_i32_1 = arith.constant 0 : i32
    return %arg0, %c0_i32, %c0_i32_0 : i32, i32, i32
  }
}

module attributes {stable_mosaic.version = 11 : i64} {
  func.func @_svp_losses_kernel(%arg0: i32, %arg1: memref<1x2x32xf32, #tpu.memory_space<vmem>>, %arg2: memref<1x32x10xf32, #tpu.memory_space<vmem>>, %arg3: memref<2x10xf32, #tpu.memory_space<vmem>>, %arg4: memref<1x1xf32, #tpu.memory_space<vmem>>, %arg5: memref<1x1xf32, #tpu.memory_space<vmem>>, %arg6: memref<2x10xf32, #tpu.memory_space<vmem>>) attributes {dimension_semantics = [#tpu.dimension_semantics<arbitrary>], iteration_bounds = array<i64: 4>, scalar_prefetch = 0 : i64, scratch_operands = 1 : i64, tpu.core_type = #tpu.core_type<tc>, window_params = [{transform_indices = @transform_0, window_bounds = array<i64: 1, 2, 32>}, {transform_indices = @transform_1, window_bounds = array<i64: 1, 32, 10>}, {pipeline_mode = #tpu.pipeline_mode<synchronous>, transform_indices = @transform_2, window_bounds = array<i64: 2, 10>}, {pipeline_mode = #tpu.pipeline_mode<synchronous>, transform_indices = @transform_3, window_bounds = array<i64: 1, 1>}, {pipeline_mode = #tpu.pipeline_mode<synchronous>, transform_indices = @transform_4, window_bounds = array<i64: 1, 1>}]} {
    %c0 = arith.constant 0 : index
    %c0_0 = arith.constant 0 : index
    %c0_1 = arith.constant 0 : index
    %0 = vector.load %arg1[%c0, %c0_0, %c0_1] : memref<1x2x32xf32, #tpu.memory_space<vmem>>, vector<1x2x32xf32>
    %1 = vector.shape_cast %0 : vector<1x2x32xf32> to vector<2x32xf32>
    %c0_2 = arith.constant 0 : index
    %c0_3 = arith.constant 0 : index
    %c0_4 = arith.constant 0 : index
    %2 = vector.load %arg2[%c0_2, %c0_3, %c0_4] : memref<1x32x10xf32, #tpu.memory_space<vmem>>, vector<1x32x10xf32>
    %3 = vector.shape_cast %2 : vector<1x32x10xf32> to vector<32x10xf32>
    %c0_5 = arith.constant 0 : index
    %c0_6 = arith.constant 0 : index
    %4 = vector.load %arg3[%c0_5, %c0_6] : memref<2x10xf32, #tpu.memory_space<vmem>>, vector<2x10xf32>
    %cst = arith.constant dense<0.000000e+00> : vector<2x10xf32>
    %5 = tpu.matmul %1, %3, %cst {dimension_numbers = #tpu.dot_dimension_numbers<[1], [0], [0], [1], [0, 0, 1, 1], [], []>} : vector<2x32xf32>, vector<32x10xf32>, vector<2x10xf32> -> vector<2x10xf32>
    %cst_7 = arith.constant dense<0xFF800000> : vector<2xf32>
    %6 = vector.multi_reduction <maximumf>, %5, %cst_7 [1] : vector<2x10xf32> to vector<2xf32>
    %7 = vector.shape_cast %6 : vector<2xf32> to vector<2x1xf32>
    %8 = vector.broadcast %7 : vector<2x1xf32> to vector<2x10xf32>
    %9 = arith.subf %5, %8 : vector<2x10xf32>
    %10 = math.exp %9 : vector<2x10xf32>
    %cst_8 = arith.constant dense<0.000000e+00> : vector<2xf32>
    %11 = vector.multi_reduction <add>, %10, %cst_8 [1] : vector<2x10xf32> to vector<2xf32>
    %12 = vector.shape_cast %11 : vector<2xf32> to vector<2x1xf32>
    %13 = math.log %12 : vector<2x1xf32>
    %14 = arith.addf %7, %13 : vector<2x1xf32>
    %15 = vector.broadcast %14 : vector<2x1xf32> to vector<2x10xf32>
    %16 = arith.subf %5, %15 : vector<2x10xf32>
    %17 = arith.mulf %4, %16 : vector<2x10xf32>
    %cst_9 = arith.constant dense<0.000000e+00> : vector<2xf32>
    %18 = vector.multi_reduction <add>, %17, %cst_9 [1] : vector<2x10xf32> to vector<2xf32>
    %19 = vector.shape_cast %18 : vector<2xf32> to vector<2x1xf32>
    %cst_10 = arith.constant dense<0.000000e+00> : vector<1xf32>
    %20 = vector.multi_reduction <add>, %19, %cst_10 [0] : vector<2x1xf32> to vector<1xf32>
    %21 = vector.shape_cast %20 : vector<1xf32> to vector<1x1xf32>
    %cst_11 = arith.constant 0.000000e+00 : f32
    %22 = vector.broadcast %cst_11 : f32 to vector<1x1xf32>
    %23 = arith.subf %22, %21 : vector<1x1xf32>
    %cst_12 = arith.constant 2.000000e+00 : f32
    %24 = vector.broadcast %cst_12 : f32 to vector<1x1xf32>
    %25 = arith.divf %23, %24 : vector<1x1xf32>
    %c0_i32 = arith.constant 0 : i32
    %26 = arith.cmpi eq, %arg0, %c0_i32 : i32
    %27 = arith.extui %26 : i1 to i32
    %c0_i32_13 = arith.constant 0 : i32
    %28 = arith.cmpi ne, %27, %c0_i32_13 : i32
    scf.if %28 {
      %cst_22 = arith.constant 0.000000e+00 : f32
      %36 = vector.broadcast %cst_22 : f32 to vector<1x1xf32>
      %c0_23 = arith.constant 0 : index
      %c0_24 = arith.constant 0 : index
      %37 = vector.load %arg4[%c0_23, %c0_24] : memref<1x1xf32, #tpu.memory_space<vmem>>, vector<1x1xf32>
      tpu.vector_store %arg4[%c0_23, %c0_24], %36 {strides = array<i32>} : memref<1x1xf32, #tpu.memory_space<vmem>>, vector<1x1xf32>,
      %cst_25 = arith.constant 0.000000e+00 : f32
      %38 = vector.broadcast %cst_25 : f32 to vector<1x1xf32>
      %c0_26 = arith.constant 0 : index
      %c0_27 = arith.constant 0 : index
      %39 = vector.load %arg5[%c0_26, %c0_27] : memref<1x1xf32, #tpu.memory_space<vmem>>, vector<1x1xf32>
      tpu.vector_store %arg5[%c0_26, %c0_27], %38 {strides = array<i32>} : memref<1x1xf32, #tpu.memory_space<vmem>>, vector<1x1xf32>,
    } else {
    }
    %c0_14 = arith.constant 0 : index
    %c0_15 = arith.constant 0 : index
    %29 = vector.load %arg4[%c0_14, %c0_15] : memref<1x1xf32, #tpu.memory_space<vmem>>, vector<1x1xf32>
    %30 = arith.addf %29, %25 : vector<1x1xf32>
    %c0_16 = arith.constant 0 : index
    %c0_17 = arith.constant 0 : index
    %31 = vector.load %arg4[%c0_16, %c0_17] : memref<1x1xf32, #tpu.memory_space<vmem>>, vector<1x1xf32>
    tpu.vector_store %arg4[%c0_16, %c0_17], %30 {strides = array<i32>} : memref<1x1xf32, #tpu.memory_space<vmem>>, vector<1x1xf32>,
    %c0_i32_18 = arith.constant 0 : i32
    %32 = arith.cmpi sgt, %arg0, %c0_i32_18 : i32
    %33 = arith.extui %32 : i1 to i32
    %c0_i32_19 = arith.constant 0 : i32
    %34 = arith.cmpi ne, %33, %c0_i32_19 : i32
    scf.if %34 {
      %36 = arith.mulf %5, %5 : vector<2x10xf32>
      %cst_22 = arith.constant dense<0.000000e+00> : vector<2xf32>
      %37 = vector.multi_reduction <add>, %36, %cst_22 [1] : vector<2x10xf32> to vector<2xf32>
      %38 = vector.shape_cast %37 : vector<2xf32> to vector<2x1xf32>
      %39 = math.sqrt %38 : vector<2x1xf32>
      %cst_23 = arith.constant 9.99999996E-13 : f32
      %40 = vector.broadcast %cst_23 : f32 to vector<2x1xf32>
      %41 = arith.maximumf %39, %40 : vector<2x1xf32>
      %42 = vector.broadcast %41 : vector<2x1xf32> to vector<2x10xf32>
      %43 = arith.divf %5, %42 : vector<2x10xf32>
      %c0_24 = arith.constant 0 : index
      %c0_25 = arith.constant 0 : index
      %44 = vector.load %arg6[%c0_24, %c0_25] : memref<2x10xf32, #tpu.memory_space<vmem>>, vector<2x10xf32>
      %45 = arith.mulf %44, %44 : vector<2x10xf32>
      %cst_26 = arith.constant dense<0.000000e+00> : vector<2xf32>
      %46 = vector.multi_reduction <add>, %45, %cst_26 [1] : vector<2x10xf32> to vector<2xf32>
      %47 = vector.shape_cast %46 : vector<2xf32> to vector<2x1xf32>
      %48 = math.sqrt %47 : vector<2x1xf32>
      %cst_27 = arith.constant 9.99999996E-13 : f32
      %49 = vector.broadcast %cst_27 : f32 to vector<2x1xf32>
      %50 = arith.maximumf %48, %49 : vector<2x1xf32>
      %51 = vector.broadcast %50 : vector<2x1xf32> to vector<2x10xf32>
      %52 = arith.divf %44, %51 : vector<2x10xf32>
      %53 = arith.subf %43, %52 : vector<2x10xf32>
      %54 = arith.mulf %53, %53 : vector<2x10xf32>
      %cst_28 = arith.constant dense<0.000000e+00> : vector<2xf32>
      %55 = vector.multi_reduction <add>, %54, %cst_28 [1] : vector<2x10xf32> to vector<2xf32>
      %56 = vector.shape_cast %55 : vector<2xf32> to vector<2x1xf32>
      %cst_29 = arith.constant dense<0.000000e+00> : vector<1xf32>
      %57 = vector.multi_reduction <add>, %56, %cst_29 [0] : vector<2x1xf32> to vector<1xf32>
      %58 = vector.shape_cast %57 : vector<1xf32> to vector<1x1xf32>
      %cst_30 = arith.constant 2.000000e+01 : f32
      %59 = vector.broadcast %cst_30 : f32 to vector<1x1xf32>
      %60 = arith.divf %58, %59 : vector<1x1xf32>
      %c0_31 = arith.constant 0 : index
      %c0_32 = arith.constant 0 : index
      %61 = vector.load %arg5[%c0_31, %c0_32] : memref<1x1xf32, #tpu.memory_space<vmem>>, vector<1x1xf32>
      %62 = arith.addf %61, %60 : vector<1x1xf32>
      %c0_33 = arith.constant 0 : index
      %c0_34 = arith.constant 0 : index
      %63 = vector.load %arg5[%c0_33, %c0_34] : memref<1x1xf32, #tpu.memory_space<vmem>>, vector<1x1xf32>
      tpu.vector_store %arg5[%c0_33, %c0_34], %62 {strides = array<i32>} : memref<1x1xf32, #tpu.memory_space<vmem>>, vector<1x1xf32>,
    } else {
    }
    %c0_20 = arith.constant 0 : index
    %c0_21 = arith.constant 0 : index
    %35 = vector.load %arg6[%c0_20, %c0_21] : memref<2x10xf32, #tpu.memory_space<vmem>>, vector<2x10xf32>
    tpu.vector_store %arg6[%c0_20, %c0_21], %5 {strides = array<i32>} : memref<2x10xf32, #tpu.memory_space<vmem>>, vector<2x10xf32>,
    return
  }
  func.func @transform_0(%arg0: i32) -> (i32, i32, i32) {
    %c0_i32 = arith.constant 0 : i32
    %c0_i32_0 = arith.constant 0 : i32
    %c0_i32_1 = arith.constant 0 : i32
    return %arg0, %c0_i32, %c0_i32_0 : i32, i32, i32
  }
  func.func @transform_1(%arg0: i32) -> (i32, i32, i32) {
    %c0_i32 = arith.constant 0 : i32
    %c0_i32_0 = arith.constant 0 : i32
    %c0_i32_1 = arith.constant 0 : i32
    return %arg0, %c0_i32, %c0_i32_0 : i32, i32, i32
  }
  func.func @transform_2(%arg0: i32) -> (i32, i32) {
    %c0_i32 = arith.constant 0 : i32
    %c0_i32_0 = arith.constant 0 : i32
    %c0_i32_1 = arith.constant 0 : i32
    return %c0_i32, %c0_i32_0 : i32, i32
  }
  func.func @transform_3(%arg0: i32) -> (i32, i32) {
    %c0_i32 = arith.constant 0 : i32
    %c0_i32_0 = arith.constant 0 : i32
    %c0_i32_1 = arith.constant 0 : i32
    return %c0_i32, %c0_i32_0 : i32, i32
  }
  func.func @transform_4(%arg0: i32) -> (i32, i32) {
    %c0_i32 = arith.constant 0 : i32
    %c0_i32_0 = arith.constant 0 : i32
    %c0_i32_1 = arith.constant 0 : i32
    return %c0_i32, %c0_i32_0 : i32, i32
  }
}

</mosaic_0001>

<bundles_post_ra>
// kernel: svp7plus_forward.3
= control target key start
LH: loop header
LB: loop body
LE: loop exit
PB: predicated region body
PF: predicated region fallthrough
CT: control target
= control target key end

     0   :  { %vm549_vm0 = vcmask 1040384   ;;  %vm551_vm1 = vcmask 1044480   ;;  %vm554_vm2 = vcmask 261120   ;;  %s936_s1 = inlined_call_operand.vmem [shape: bf16[768,32], index: 1, kind: input, shape index: {}]   ;;  %s937_s0 = inlined_call_operand.vmem [shape: f32[8,768], index: 0, kind: input, shape index: {}]   ;;  %s938_s2 = inlined_call_operand.vmem [shape: f32[1,32], index: 2, kind: input, shape index: {}]   ;;  %s939_s3 = inlined_call_operand.vmem [shape: f32[1,32], index: 3, kind: input, shape index: {}]   ;;  %s940_s4 = inlined_call_operand.vmem [shape: f32[8,32], index: 4, kind: input, shape index: {}]   ;;  %s941_s5 = inlined_call_operand.vmem [shape: f32[16,32], index: 5, kind: output, shape index: {}]  }
   0x1   :  { %v681_v0 = vld [vmem:[%s936_s1 + $0x40] sm:$0xff]   ;;  %v685_v4 = vld [vmem:[%s936_s1 + $0x48] sm:$0xff]   ;;  %v689_v8 = vld [vmem:[%s936_s1 + $0x50] sm:$0xff]  }
   0x2   :  { %v682_v1 = vld [vmem:[%s936_s1] sm:$0xff]   ;;  %615 = vmatprep.subr.bf16.mxu0 %v681_v0  ;;  %v686_v5 = vld [vmem:[%s936_s1 + $0x8] sm:$0xff]   ;;  %v690_v9 = vld [vmem:[%s936_s1 + $0x10] sm:$0xff]  }
   0x3   :  { %v683_v2 = vld [vmem:[%s936_s1 + $0xc0] sm:$0xff]   ;;  %616 = vmatpush3.bf16.msra.mxu0 %v682_v1  ;;  %v687_v6 = vld [vmem:[%s936_s1 + $0xc8] sm:$0xff]   ;;  %v691_v10 = vld [vmem:[%s936_s1 + $0xd0] sm:$0xff]  }
   0x4   :  { %v684_v3 = vld [vmem:[%s936_s1 + $0x80] sm:$0xff]   ;;  %637 = vmatprep.subr.bf16.mxu1 %v683_v2  ;;  %617 = vmatprep.subr.bf16.mxu0 %v685_v4  ;;  %v688_v7 = vld [vmem:[%s936_s1 + $0x88] sm:$0xff]   ;;  %v692_v11 = vld [vmem:[%s936_s1 + $0x90] sm:$0xff]  }
   0x5   :  { %638 = vmatpush3.bf16.msra.mxu1 %v684_v3  ;;  %v693_v12 = vld [vmem:[%s936_s1 + $0x58] sm:$0xff]   ;;  %v697_v16 = vld [vmem:[%s936_s1 + $0x60] sm:$0xff]   ;;  %v701_v20 = vld [vmem:[%s936_s1 + $0x68] sm:$0xff]  }
   0x6   :  { %639 = vmatprep.subr.bf16.mxu1 %v687_v6  ;;  %v694_v13 = vld [vmem:[%s936_s1 + $0x18] sm:$0xff]   ;;  %v698_v17 = vld [vmem:[%s936_s1 + $0x20] sm:$0xff]   ;;  %v702_v21 = vld [vmem:[%s936_s1 + $0x28] sm:$0xff]  }
   0x7   :  { %618 = vmatpush3.bf16.msra.mxu0 %v686_v5  ;;  %v695_v14 = vld [vmem:[%s936_s1 + $0xd8] sm:$0xff]   ;;  %v699_v18 = vld [vmem:[%s936_s1 + $0xe0] sm:$0xff]   ;;  %v703_v22 = vld [vmem:[%s936_s1 + $0xe8] sm:$0xff]  }
   0x8   :  { %619 = vmatprep.subr.bf16.mxu0 %v689_v8  ;;  %v696_v15 = vld [vmem:[%s936_s1 + $0x98] sm:$0xff]   ;;  %v700_v19 = vld [vmem:[%s936_s1 + $0xa0] sm:$0xff]   ;;  %v704_v23 = vld [vmem:[%s936_s1 + $0xa8] sm:$0xff]  }
   0x9   :  { %640 = vmatpush3.bf16.msra.mxu1 %v688_v7  ;;  %v705_v24 = vld [vmem:[%s936_s1 + $0x70] sm:$0xff]   ;;  %v709_v28 = vld [vmem:[%s936_s1 + $0x78] sm:$0xff]   ;;  %v22_v31 = vld [vmem:[%s937_s0 + $0x8] sm:$0xff] }
   0xa   :  { %641 = vmatprep.subr.bf16.mxu1 %v691_v10  ;;  %v706_v25 = vld [vmem:[%s936_s1 + $0x30] sm:$0xff]   ;;  %v710_v29 = vld [vmem:[%s936_s1 + $0x38] sm:$0xff]   ;;  %v28_v32 = vpack.c.bf16 %v22_v31, %v22_v31  ;;  %v21_v34 = vld [vmem:[%s937_s0] sm:$0xff] }
   0xb   :  { %620 = vmatpush3.bf16.msra.mxu0 %v690_v9  ;;  %v707_v26 = vld [vmem:[%s936_s1 + $0xf0] sm:$0xff]   ;;  %v711_v30 = vld [vmem:[%s936_s1 + $0xf8] sm:$0xff]   ;;  %v27_v35 = vpack.c.bf16 %v21_v34, %v21_v34  ;;  %v713_v36 = vld [vmem:[%s936_s1 + $0x140] sm:$0xff]  }
   0xc   :  { %621 = vmatprep.subr.bf16.mxu0 %v693_v12  ;;  %v708_v27 = vld [vmem:[%s936_s1 + $0xb0] sm:$0xff]   ;;  %v712_v33 = vld [vmem:[%s936_s1 + $0xb8] sm:$0xff]   ;;  %456 = vmatprep.mubr.bf16.mxu0 %v28_v32  ;;  %v714_v39 = vld [vmem:[%s936_s1 + $0x100] sm:$0xff]  }
   0xd   :  { %642 = vmatpush3.bf16.msra.mxu1 %v692_v11  ;;  %v24_v37 = vld [vmem:[%s937_s0 + $0x18] sm:$0xff]  ;;  %v23_v40 = vld [vmem:[%s937_s0 + $0x10] sm:$0xff]  ;;  %v715_v42 = vld [vmem:[%s936_s1 + $0x148] sm:$0xff]  }
   0xe   :  { %643 = vmatprep.subr.bf16.mxu1 %v695_v14  ;;  %v30_v38 = vpack.c.bf16 %v24_v37, %v24_v37  ;;  %v29_v41 = vpack.c.bf16 %v23_v40, %v23_v40  ;;  %v716_v43 = vld [vmem:[%s936_s1 + $0x108] sm:$0xff]   ;;  %v717_v44 = vld [vmem:[%s936_s1 + $0x150] sm:$0xff]   ;;  %v719_v46 = vld [vmem:[%s936_s1 + $0x158] sm:$0xff]  }
   0xf   :  { %622 = vmatpush3.bf16.msra.mxu0 %v694_v13  ;;  %v718_v45 = vld [vmem:[%s936_s1 + $0x110] sm:$0xff]   ;;  %v720_v47 = vld [vmem:[%s936_s1 + $0x118] sm:$0xff]   ;;  %v721_v48 = vld [vmem:[%s936_s1 + $0x160] sm:$0xff]  }
  0x10   :  { %623 = vmatprep.subr.bf16.mxu0 %v697_v16  ;;  %496 = vmatprep.mubr.bf16.mxu1 %v30_v38  ;;  %v722_v49 = vld [vmem:[%s936_s1 + $0x120] sm:$0xff]   ;;  %v723_v50 = vld [vmem:[%s936_s1 + $0x168] sm:$0xff]   ;;  %v725_v54 = vld [vmem:[%s936_s1 + $0x170] sm:$0xff]  }
  0x11   :  { %644 = vmatpush3.bf16.msra.mxu1 %v696_v15  ;;  %v26_v51 = vld [vmem:[%s937_s0 + $0x28] sm:$0xff]  ;;  %v726_v55 = vld [vmem:[%s936_s1 + $0x130] sm:$0xff]   ;;  %v727_v56 = vld [vmem:[%s936_s1 + $0x178] sm:$0xff]  }
  0x12   :  { %645 = vmatprep.subr.bf16.mxu1 %v699_v18  ;;  %v32_v52 = vpack.c.bf16 %v26_v51, %v26_v51  ;;  %v724_v53 = vld [vmem:[%s936_s1 + $0x128] sm:$0xff]   ;;  %v728_v57 = vld [vmem:[%s936_s1 + $0x138] sm:$0xff]   ;;  %v25_v58 = vld [vmem:[%s937_s0 + $0x20] sm:$0xff] }
  0x13   :  { %624 = vmatpush3.bf16.msra.mxu0 %v698_v17  ;;  %v31_v59 = vpack.c.bf16 %v25_v58, %v25_v58  ;;  %v566_v61 = vld [vmem:[%s938_s2] ss:$0 sm:$0xff] }
  0x14   :  { %625 = vmatprep.subr.bf16.mxu0 %v701_v20  ;;  %v545_v15 = vld [vmem:[%s939_s3] sm:$0x1] }
  0x15   :  { %646 = vmatpush3.bf16.msra.mxu1 %v700_v19  ;;  %v544_v18 = vld [vmem:[%s940_s4] sm:$0xff] }
  0x16   :  { %647 = vmatprep.subr.bf16.mxu1 %v703_v22 }
  0x17   :  { %626 = vmatpush3.bf16.msra.mxu0 %v702_v21 }
  0x18   :  { %627 = vmatprep.subr.bf16.mxu0 %v705_v24 }
  0x19   :  { %648 = vmatpush3.bf16.msra.mxu1 %v704_v23 }
  0x1a   :  { %649 = vmatprep.subr.bf16.mxu1 %v707_v26 }
  0x1b   :  { %628 = vmatpush3.bf16.msra.mxu0 %v706_v25 }
  0x1c   :  { %629 = vmatprep.subr.bf16.mxu0 %v709_v28 }
  0x1d   :  { %650 = vmatpush3.bf16.msra.mxu1 %v708_v27 }
  0x1e   :  { %651 = vmatprep.subr.bf16.mxu1 %v711_v30 }
  0x1f   :  { %630 = vmatpush3.bf16.msra.mxu0 %v710_v29 }
  0x20   :  { %659 = vmatprep.subr.bf16.mxu0 %v713_v36 }
  0x21   :  { %652 = vmatpush3.bf16.msra.mxu1 %v712_v33 }
  0x22   :  { %457 = vmatmul.mubr.bf16.vlgmr.msra.gmra.mrb[0].mxu0 %v27_v35 }
  0x23   :  { %660 = vmatpush3.bf16.msra.mxu0 %v714_v39  ;;  %536 = vmatprep.mubr.bf16.mxu0 %v32_v52 }
  0x24   :  { %497 = vmatmul.mubr.bf16.vlgmr.msra.gmra.mrb[0].mxu1 %v29_v41  ;;  %661 = vmatprep.subr.bf16.mxu0 %v715_v42 }
  0x27   :  { %662 = vmatpush3.bf16.msra.mxu0 %v716_v43 }
  0x28   :  { %663 = vmatprep.subr.bf16.mxu0 %v717_v44 }
  0x2b   :  { %664 = vmatpush3.bf16.msra.mxu0 %v718_v45 }
  0x2c   :  { %665 = vmatprep.subr.bf16.mxu0 %v719_v46 }
  0x2f   :  { %666 = vmatpush3.bf16.msra.mxu0 %v720_v47 }
  0x30   :  { %667 = vmatprep.subr.bf16.mxu0 %v721_v48 }
  0x33   :  { %668 = vmatpush3.bf16.msra.mxu0 %v722_v49 }
  0x34   :  { %669 = vmatprep.subr.bf16.mxu0 %v723_v50 }
  0x37   :  { %670 = vmatpush3.bf16.msra.mxu0 %v724_v53 }
  0x38   :  { %671 = vmatprep.subr.bf16.mxu0 %v725_v54 }
  0x3b   :  { %672 = vmatpush3.bf16.msra.mxu0 %v726_v55 }
  0x3c   :  { %673 = vmatprep.subr.bf16.mxu0 %v727_v56 }
  0x3f   :  { %674 = vmatpush3.bf16.msra.mxu0 %v728_v57 }
  0x42   :  { %537 = vmatmul.mubr.bf16.vlgmr.msra.gmra.mrb[4].mxu0 %v31_v59 }
  0xf5   :  { %v631_v60 = vpop.f32.mrb[0].mxu0 }
  0xf6   :  { %v632_v62 = vpop.f32.mrb[1].mxu0 }
  0xf7   :  { %v633_v63 = vadd.f32 %v632_v62, %v631_v60  ;;  %v634_v0 = vpop.f32.mrb[2].mxu0  ;;  %v653_v1 = vpop.f32.mrb[0].mxu1 }
  0xf8   :  { %v635_v2 = vpop.f32.mrb[3].mxu0  ;;  %v654_v4 = vpop.f32.mrb[1].mxu1 }
  0xf9   :  { %v459_v3 = vadd.f32 %v633_v63, %v566_v61  ;;  %v655_v5 = vadd.f32 %v654_v4, %v653_v1  ;;  %v656_v6 = vpop.f32.mrb[2].mxu1 }
  0xfa   :  { %v657_v7 = vpop.f32.mrb[3].mxu1 }
  0xfb   :  { %v499_v8 = vadd.f32 %v655_v5, %v459_v3 }
 0x115   :  { %v675_v9 = vpop.f32.mrb[4].mxu0 }
 0x116   :  { %v676_v10 = vpop.f32.mrb[5].mxu0 }
 0x117   :  { %v677_v11 = vadd.f32 %v676_v10, %v675_v9  ;;  %v678_v12 = vpop.f32.mrb[6].mxu0 }
 0x118   :  { %v679_v13 = vpop.f32.mrb[7].mxu0 }
 0x119   :  { %v539_v14 = vadd.f32 %v677_v11, %v499_v8 }
 0x11b   :  { %v547_v16 = vrot.slane %v539_v14, 7  ;;  %v556_v17 = vrot.slane %v539_v14, 3 }
 0x11d   :  { %v550_v19 = vsel %vm549_vm0, %v545_v15, %v547_v16  ;;  %v558_v20 = vsel %vm549_vm0, %v545_v15, %v556_v17 }
 0x11e   :  { %v552_v21 = vsel %vm551_vm1, %v550_v19, 0.0  ;;  %v559_v22 = vsel %vm551_vm1, %v558_v20, 0.0 }
 0x11f   :  { %v553_v23 = vadd.f32 %v552_v21, %v544_v18  ;;  %v560_v24 = vadd.f32 %v559_v22, %v544_v18 }
 0x121   :  { %555 = vst.msk [vmem:[%s941_s5] sm:$0xff] %vm554_vm2, %v553_v23  ;;  %561 = vst.msk [vmem:[%s941_s5 + $0x8] sm:$0xff] %vm554_vm2, %v560_v24 }

// kernel: svp7plus_forward.5
= control target key start
LH: loop header
LB: loop body
LE: loop exit
PB: predicated region body
PF: predicated region fallthrough
CT: control target
= control target key end

     0   :  { %10 = vsyncpa [#allocation4], 0  ;;  %s726_s0 = inlined_call_operand.vmem [shape: f32[4,2,32], index: 0, kind: input, shape index: {}]   ;;  %s727_s1 = inlined_call_operand.vmem [shape: f32[4,32,10], index: 1, kind: input, shape index: {}]   ;;  %s728_s2 = inlined_call_operand.vmem [shape: f32[2,10], index: 2, kind: input, shape index: {}]   ;;  %s729_s3 = inlined_call_operand.hbm [shape: f32[1,1], index: 3, kind: output, shape index: {0}]   ;;  %s730_s4 = inlined_call_operand.hbm [shape: f32[1,1], index: 4, kind: output, shape index: {1}]  }
   0x1   :  { %11 = vsyncpa [#allocation6], 0  ;;  %s627_s15 = smov 0  }
   0x2 LB: > { %s633_s16 = sadd.s32 4294967295, %s594_s15   ;;  %p454_p0 = scmp.ge.s32.totalorder %s594_s15, 1  ;;  %s594_s15 = sphi %s627_s15, %s17_s15  }
   0x3   : > { %p166_p1 = scmp.lt.s32.totalorder %s594_s15, 5 }
   0x5   : > { %p167_p2 = pnand %p454_p0, %p166_p1 }
   0x6   : > { %p191_p3 = scmp.lt.s32.totalorder (!%p167_p2), %s633_s16, 3  ;;  %v596_v0 = vmov (!%p167_p2), 0.0|0.0   ;;  %vm597_vm0 = vmmov (!%p167_p2), 0   ;;  %v598_v1 = vmov (!%p167_p2), 0.0   ;;  %vm206_vm1 = vcmask (!%p167_p2), 261120   ;;  %p459_p4 = scmp.ne.s32.totalorder (!%p167_p2), %s633_s16, 0 }
   0x7   : > { %170 = sbr.rel (%p167_p2) target bundleno = 1112 (0x458), region = 32  ;;  %484 = vmatprep.subr.bf16.mxu0 (!%p167_p2), %v596_v0  ;;  %481 = vmatprep.mubr.msk.f32.mxu0 (!%p167_p2), %vm597_vm0, %v598_v1  ;;  %vm280_vm2 = vcmask (!%p167_p2), 74752   ;;  %v205_v21 = vld [vmem:[%s728_s2] sm:$0x3] (!%p167_p2)  ;;  %vm298_vm3 = vcmask (!%p167_p2), 1041408  }
   0xe   : > { %s192_s17 = scalar_select %p191_p3, %s633_s16, 3 }
   0xf   : > { %vm313_vm4 = vcmask (!%p459_p4), 0   ;;  %v599_v35 = vmov (!%p459_p4), 0.0  }
  0x10   : > { %s467_s18 = sshll.u32 %s192_s17, 5  ;;  %s455_s22 = sshll.u32 %s192_s17, 1  ;;  %314 = vst.msk [vmem:[#allocation3] sm:$0x1] (!%p459_p4), %vm313_vm4, %v599_v35  ;;  %315 = vst.msk [vmem:[#allocation5] sm:$0x1] (!%p459_p4), %vm313_vm4, %v599_v35 }
  0x11   : > { %s199_s21 = scalar_lea.vmem %s727_s1, %s467_s18  ;;  %s194_s25 = scalar_lea.vmem %s726_s0, %s455_s22 }
  0x12   : > { %v201_v2 = vld [vmem:[%s199_s21] sm:$0xff]  ;;  %v202_v3 = vld [vmem:[%s199_s21 + $0x8] sm:$0xff]  ;;  %v203_v4 = vld [vmem:[%s199_s21 + $0x10] sm:$0xff] }
  0x13   : > { %v485_v5 = vpack.c.bf16 %v202_v3, %v201_v2  ;;  %v204_v6 = vld [vmem:[%s199_s21 + $0x18] sm:$0xff]  ;;  %v200_v8 = vld [vmem:[%s194_s25] sm:$0x3] }
  0x14   : > { %v488_v7 = vpack.c.bf16 %v204_v6, %v203_v4 }
  0x15   : > { %486 = vmatpush3.bf16.msra.mxu0 %v485_v5 }
  0x16   : > { %487 = vmatprep.subr.bf16.mxu0 %v596_v0 }
  0x19   : > { %489 = vmatpush3.bf16.msra.mxu0 %v488_v7 }
  0x1c   : > { %482 = vmatmul.mubr.msk.f32.vlgmr.msra.gmra.mrb[0].mxu0 %vm206_vm1, %v200_v8 }
  0xef   : > { %v645_v9 = vpop.f32.mrb[0].mxu0 }
  0xf0   : > { %v483_v10 = vpop.f32.mrb[1].mxu0  ;;  %v281_v11 = vsel %vm280_vm2, %v645_v9, -inf }
  0xf1   : > { %282 = vmax.xlane.f32.xlu0 %v281_v11 }
 0x17e   : > { %v283_v12 = vpop.xlane.xlu0 %282 }
 0x17f   : > { %v284_v13 = vsub.f32 %v645_v9, %v283_v12 }
 0x181   : > { %v285_v14 = vmul.f32 1.442695, %v284_v13 }
 0x183   : > { %516 = vpow2.f32 %v285_v14 }
 0x18d   : > { %v517_v15 = vpop.eup %516 }
 0x18e   : > { %v287_v16 = vsel %vm280_vm2, %v517_v15, 0.0 }
 0x18f   : > { %288 = vadd.xlane.f32.xlu0 %v287_v16 }
 0x21c   : > { %v289_v17 = vpop.xlane.xlu0 %288 }
 0x21d   : > { %518 = vlog2.f32 %v289_v17 }
 0x227   : > { %v519_v18 = vpop.eup %518 }
 0x228   : > { %v291_v19 = vmul.f32 0.6931472, %v519_v18 }
 0x22a   : > { %v292_v20 = vadd.f32 %v291_v19, %v283_v12 }
 0x22c   : > { %v293_v22 = vsub.f32 %v645_v9, %v292_v20 }
 0x22e   : > { %v294_v23 = vmul.f32 %v293_v22, %v205_v21 }
 0x230   : > { %v295_v24 = vsel %vm280_vm2, %v294_v23, 0.0 }
 0x231   : > { %296 = vadd.xlane.f32.xlu1 %v295_v24 }
 0x2be   : > { %v297_v25 = vpop.xlane.xlu1 %296 }
 0x2bf   : > { %v299_v26 = vsel %vm298_vm3, %v297_v25, 0.0 }
 0x2c0   : > { %v300_v27 = vrot.slane %v299_v26, 4 }
 0x2c2   : > { %v301_v28 = vadd.f32 %v300_v27, %v299_v26 }
 0x2c4   : > { %v302_v29 = vrot.slane %v301_v28, 2 }
 0x2c6   : > { %v303_v30 = vadd.f32 %v302_v29, %v301_v28 }
 0x2c8   : > { %v304_v31 = vrot.slane %v303_v30, 1  ;;  %312 = sbr.rel (%p459_p4) target bundleno = 719 (0x2cf), region = 36 }
 0x2ca   : > { %v305_v32 = vadd.f32 %v304_v31, %v303_v30 }
 0x2cc   : > { %v306_v33 = vsub.f32 0.0, %v305_v32 }
 0x2ce   : > { %v308_v34 = vmul.f32 0.5, %v306_v33 }
 0x2cf PF: > { %v316_v36 = vld [vmem:[#allocation3] sm:$0x1]  ;;  %vm318_vm5 = vcmask 0   ;;  %p460_p5 = scmp.le.s32.totalorder %s633_s16, 0 }
 0x2d0   : > { %v317_v37 = vadd.f32 %v316_v36, %v308_v34  ;;  %v324_v38 = vmul.f32 (!%p460_p5), %v645_v9, %v645_v9  ;;  %v338_v39 = vld [vmem:[#allocation2] sm:$0x3] (!%p460_p5)  ;;  %v367_v8 = vld [vmem:[#allocation5] sm:$0x1] (!%p460_p5) }
 0x2d1   : > { %323 = sbr.rel (%p460_p5) target bundleno = 1064 (0x428), region = 40  ;;  %v339_v40 = vmul.f32 (!%p460_p5), %v338_v39, %v338_v39 }
 0x2d2   : > { %319 = vst.msk [vmem:[#allocation3] sm:$0x1] %vm318_vm5, %v317_v37  ;;  %v325_v41 = vsel (!%p460_p5), %vm280_vm2, %v324_v38, 0.0 }
 0x2d3   : > { %326 = vadd.xlane.f32.xlu0 (!%p460_p5), %v325_v41  ;;  %v340_v42 = vsel (!%p460_p5), %vm280_vm2, %v339_v40, 0.0 }
 0x2d7   : > { %341 = vadd.xlane.f32.xlu0 (!%p460_p5), %v340_v42 }
 0x360   : > { %v327_v43 = vpop.xlane.xlu0 %326 }
 0x361   : > { %520 = vrsqrt.f32 %v327_v43  ;;  %vm330_vm6 = vcmp.eq.f32.partialorder %v327_v43, inf  ;;  %v333_v47 = vand.u32 2147483648, %v327_v43  ;;  %vm332_vm7 = vcmp.eq.f32.partialorder %v327_v43, 0.0 }
 0x364   : > { %v342_v44 = vpop.xlane.xlu0 %341 }
 0x365   : > { %522 = vrsqrt.f32 %v342_v44  ;;  %vm345_vm8 = vcmp.eq.f32.partialorder %v342_v44, inf  ;;  %v348_v53 = vand.u32 2147483648, %v342_v44  ;;  %vm347_vm9 = vcmp.eq.f32.partialorder %v342_v44, 0.0 }
 0x36b   : > { %v521_v45 = vpop.eup %520 }
 0x36c   : > { %v329_v46 = vmul.f32 %v521_v45, %v327_v43 }
 0x36e   : > { %v331_v48 = vsel %vm330_vm6, %v327_v43, %v329_v46 }
 0x36f   : > { %v523_v49 = vpop.eup %522  ;;  %v334_v50 = vsel %vm332_vm7, %v333_v47, %v331_v48 }
 0x370   : > { %v344_v51 = vmul.f32 %v523_v49, %v342_v44  ;;  %v335_v52 = vmax.f32 %v334_v50, 1e-12 }
 0x372   : > { %v346_v54 = vsel %vm345_vm8, %v342_v44, %v344_v51  ;;  %524 = vrcp.f32 %v335_v52 }
 0x373   : > { %v349_v55 = vsel %vm347_vm9, %v348_v53, %v346_v54 }
 0x374   : > { %v350_v56 = vmax.f32 %v349_v55, 1e-12 }
 0x376   : > { %526 = vrcp.f32 %v350_v56 }
 0x37c   : > { %v525_v57 = vpop.eup %524 }
 0x37d   : > { %v337_v59 = vmul.f32 %v525_v57, %v645_v9 }
 0x380   : > { %v527_v58 = vpop.eup %526 }
 0x381   : > { %v352_v60 = vmul.f32 %v527_v58, %v338_v39 }
 0x383   : > { %v353_v61 = vsub.f32 %v337_v59, %v352_v60 }
 0x385   : > { %v354_v62 = vmul.f32 %v353_v61, %v353_v61 }
 0x387   : > { %v355_v63 = vsel %vm280_vm2, %v354_v62, 0.0 }
 0x388   : > { %356 = vadd.xlane.f32.xlu1 %v355_v63 }
 0x415   : > { %v357_v0 = vpop.xlane.xlu1 %356 }
 0x416   : > { %v358_v1 = vsel %vm298_vm3, %v357_v0, 0.0 }
 0x417   : > { %v359_v2 = vrot.slane %v358_v1, 4 }
 0x419   : > { %v360_v3 = vadd.f32 %v359_v2, %v358_v1 }
 0x41b   : > { %v361_v4 = vrot.slane %v360_v3, 2 }
 0x41d   : > { %v362_v5 = vadd.f32 %v361_v4, %v360_v3 }
 0x41f   : > { %v363_v6 = vrot.slane %v362_v5, 1 }
 0x421   : > { %v364_v7 = vadd.f32 %v363_v6, %v362_v5 }
 0x423   : > { %v366_v10 = vmul.f32 0.05, %v364_v7 }
 0x425   : > { %v368_v11 = vadd.f32 %v367_v8, %v366_v10 }
 0x427   : > { %369 = vst.msk [vmem:[#allocation5] sm:$0x1] %vm318_vm5, %v368_v11 }
 0x428 PF: > { %370 = vst.msk [vmem:[#allocation2] sm:$0x3] %vm280_vm2, %v645_v9  ;;  %p498_p6 = scmp.eq.s32.totalorder %s633_s16, 3  ;;  %s600_s28 = smov [#allocation3]  }
 0x429   : > { %s378_s29 = sshll.u32 %s600_s28, 4  ;;  %s601_s30 = smov [#allocation5]   ;;  %s379_s29 = int_to_ptr.vmem [resolvable:$true] %s378_s29 }
 0x42a   : > { %s389_s5 = sshll.u32 %s601_s30, 4  ;;  %s528_s6 = scalar_lea.vmem %s379_s29, 16  ;;  %s671_s5 = int_to_ptr.vmem [resolvable:$true] %s389_s5 }
 0x42b   : > { %p529_p7 = scmp.ne.s32.totalorder %s379_s29, %s528_s6  ;;  %s534_s7 = scalar_lea.vmem %s379_s29, 32 }
 0x42c   : > { %p535_p10 = scmp.lt.s32.totalorder %s379_s29, %s379_s29  ;;  %p536_p11 = scmp.lt.s32.totalorder %s534_s7, %s528_s6 }
 0x42d   : > { %p530_p8 = pnand %p529_p7, %p498_p6 }
 0x42e   : > { %p537_p12 = por %p536_p11, %p535_p10 }
 0x42f   : > { %p531_p9 = pneg %p530_p8 }
 0x431   : > { %p538_p13 = pnand %p537_p12, %p531_p9 }
 0x433   : > { %541 = shalt.err (!%p538_p13)
}
 0x434   : > { %s542_s10 = scalar_lea.hbm %s729_s3, 16 }
 0x435   : > { %p543_p0 = scmp.ne.s32.totalorder %s729_s3, %s542_s10  ;;  %p548_p3 = scmp.lt.u32.totalorder %s542_s10, %s729_s3 }
 0x437   : > { %p544_p1 = pnand %p543_p0, %p498_p6 }
 0x439   : > { %p545_p2 = pneg %p544_p1 }
 0x43b   : > { %p550_p4 = pnand %p548_p3, %p545_p2 }
 0x43d   : > { %553 = shalt.err (!%p550_p4)
}
 0x43e   : > { %491 = dma.vmem_to_hbm [thread:$0]  (%p498_p6), %s379_s29, 16, %s729_s3, [#allocation4]  }
 0x43f   : > { %s554_s19 = scalar_lea.vmem %s671_s5, 16  ;;  %s560_s20 = scalar_lea.vmem %s671_s5, 32 }
 0x440   : > { %p555_p5 = scmp.ne.s32.totalorder %s671_s5, %s554_s19  ;;  %p561_p9 = scmp.lt.s32.totalorder %s671_s5, %s671_s5 }
 0x441   : > { %p562_p10 = scmp.lt.s32.totalorder %s560_s20, %s554_s19 }
 0x442   : > { %p556_p7 = pnand %p555_p5, %p498_p6 }
 0x443   : > { %p563_p11 = por %p562_p10, %p561_p9 }
 0x444   : > { %p557_p8 = pneg %p556_p7 }
 0x446   : > { %p564_p12 = pnand %p563_p11, %p557_p8 }
 0x448   : > { %567 = shalt.err (!%p564_p12)
}
 0x449   : > { %s568_s23 = scalar_lea.hbm %s730_s4, 16 }
 0x44a   : > { %p569_p13 = scmp.ne.s32.totalorder %s730_s4, %s568_s23  ;;  %p574_p2 = scmp.lt.u32.totalorder %s568_s23, %s730_s4 }
 0x44c   : > { %p570_p0 = pnand %p569_p13, %p498_p6 }
 0x44e   : > { %p571_p1 = pneg %p570_p0 }
 0x450   : > { %p576_p3 = pnand %p574_p2, %p571_p1 }
 0x452   : > { %579 = shalt.err (!%p576_p3)
}
 0x453   : > { %493 = dma.vmem_to_hbm [thread:$0]  (%p498_p6), %s671_s5, 16, %s730_s4, [#allocation6]  }
 0x454   : > { %585 = dma.done.wait (%p498_p6), [#allocation4], 16  }
 0x455   : > { %587 = vsyncadd (%p498_p6), [#allocation4], 4294967280 }
 0x456   : > { %589 = dma.done.wait (%p498_p6), [#allocation6], 16  }
 0x457   : > { %591 = vsyncadd (%p498_p6), [#allocation6], 4294967280 }
 0x458 PF: > { %s17_s15 = sadd.s32 1, %s594_s15  }
 0x459   : > { %p14_p4 = scmp.ge.s32.totalorder %s17_s15, 6  }
 0x45b   :  { %16 = sbr.rel (!%p14_p4) target bundleno = 2 (0x2), region = 78 }
 0x462   :  { %406 = vsyncpa [#allocation4], 1 }
 0x463   :  { %408 = vsyncpa [#allocation4 + $0x1], 1 }
 0x464   :  { %409 = vsyncpa [#allocation6], 1 }

// kernel: svp7plus_forward.4
= control target key start
LH: loop header
LB: loop body
LE: loop exit
PB: predicated region body
PF: predicated region fallthrough
CT: control target
= control target key end

     0   :  { %s2162_s25 = smov 0   ;;  %s2456_s0 = inlined_call_operand.vmem [shape: f32[16,32], index: 0, kind: input, shape index: {}]   ;;  %s2457_s1 = inlined_call_operand.vmem [shape: f32[4,1,32], index: 1, kind: input, shape index: {}]   ;;  %s2458_s2 = inlined_call_operand.vmem [shape: f32[4,1,32], index: 2, kind: input, shape index: {}]   ;;  %s2459_s3 = inlined_call_operand.vmem [shape: bf16[4,32,96], index: 3, kind: input, shape index: {}]   ;;  %s2460_s4 = inlined_call_operand.vmem [shape: f32[4,1,96], index: 4, kind: input, shape index: {}]   ;;  %s2461_s5 = inlined_call_operand.vmem [shape: bf16[4,32,32], index: 5, kind: input, shape index: {}]   ;;  %s2462_s6 = inlined_call_operand.vmem [shape: f32[4,1,32], index: 6, kind: input, shape index: {}]   ;;  %s2463_s7 = inlined_call_operand.vmem [shape: f32[4,1,32], index: 7, kind: input, shape index: {}]   ;;  %s2464_s8 = inlined_call_operand.vmem [shape: f32[4,1,32], index: 8, kind: input, shape index: {}]   ;;  %s2465_s9 = inlined_call_operand.vmem [shape: bf16[4,32,128], index: 9, kind: input, shape index: {}]   ;;  %s2466_s10 = inlined_call_operand.vmem [shape: f32[4,1,128], index: 10, kind: input, shape index: {}]   ;;  %s2467_s11 = inlined_call_operand.vmem [shape: bf16[4,128,32], index: 11, kind: input, shape index: {}]   ;;  %s2468_s12 = inlined_call_operand.vmem [shape: f32[4,1,32], index: 12, kind: input, shape index: {}]   ;;  %s2469_s13 = inlined_call_operand.vmem [shape: f32[4,2,32], index: 13, kind: output, shape index: {}]  }
   0x1   :  { %2472 = sst [smem:[#allocation5_spill]] %s2458_s2 }
   0x2   :  { %2473 = sst [smem:[#allocation6_spill]] %s2459_s3 }
   0x3   :  { %2474 = sst [smem:[#allocation7_spill]] %s2461_s5 }
   0x4 LB: > { %2475 = sst [smem:[#allocation3_spill]] %s2082_s25  ;;  %s1814_s26 = sadd.s32 4294967295, %s2082_s25   ;;  %s2082_s25 = sphi %s2162_s25, %s23_s25  }
   0x5   : > { %p1818_p0 = scmp.ge.s32.totalorder %s2082_s25, 1  ;;  %p481_p1 = scmp.lt.s32.totalorder %s2082_s25, 5 }
   0x7   : > { %p482_p2 = pnand %p1818_p0, %p481_p1 }
   0x9   : > { %485 = sbr.rel (%p482_p2) target bundleno = 3741 (0xe9d), region = 72 }
  0x10   : > { %p563_p3 = scmp.lt.s32.totalorder %s1814_s26, 3  ;;  %s2477_s3 = sld [smem:[#allocation6_spill]] }
  0x11   : > { %s2478_s5 = sld [smem:[#allocation7_spill]]  ;;  %p1828_p4 = scmp.ne.s32.totalorder %s1814_s26, 0 }
  0x12   : > { %s2170_s27 = scalar_select %p563_p3, %s1814_s26, 3 }
  0x13   : > { %615 = sbr.rel (%p1828_p4) target bundleno = 26 (0x1a), region = 76  ;;  %v616_v0 = vld [vmem:[%s2456_s0] sm:$0xff] (!%p1828_p4)  ;;  %vm618_vm0 = vcmask (!%p1828_p4), 261120   ;;  %v617_v1 = vld [vmem:[%s2456_s0 + $0x8] sm:$0xff] (!%p1828_p4) }
  0x14   : > { %s1867_s17 = sshll.u32 %s2170_s27, 4  ;;  %s606_s18 = scalar_lea.vmem %s2468_s12, %s2170_s27  ;;  %619 = vst.msk [vmem:[#allocation2] sm:$0xff] (!%p1828_p4), %vm618_vm0, %v616_v0  ;;  %620 = vst.msk [vmem:[#allocation2 + $0x8] sm:$0xff] (!%p1828_p4), %vm618_vm0, %v617_v1 }
  0x15   : > { %s1827_s19 = sshll.u32 %s2170_s27, 1 }
  0x16   : > { %s2188_s23 = scalar_lea.vmem %s2477_s3, %s1867_s17  ;;  %s2210_s3 = scalar_lea.vmem %s2465_s9, %s1867_s17 }
  0x17   : > { %s2193_s29 = scalar_lea.vmem %s2478_s5, %s1867_s17  ;;  %s598_s5 = scalar_lea.vmem %s2466_s10, %s2170_s27 }
  0x18   : > { %2479 = sst [smem:[#allocation4_spill]] %s2193_s29  ;;  %s1870_s29 = sshll.u32 %s2170_s27, 6 }
  0x19   : > { %s2220_s14 = scalar_lea.vmem %s2467_s11, %s1870_s29  ;;  %s2230_s17 = scalar_lea.vmem %s2469_s13, %s1827_s19 }
  0x1a PF: > { %vm625_vm1 = vcmask 261120   ;;  %v2034_v16 = vld [vmem:[%s2188_s23] sm:$0xff]   ;;  %v2084_v17 = vmov 0.0   ;;  %v2035_v18 = vld [vmem:[%s2188_s23 + $0x8] sm:$0xff]   ;;  %vm2085_vm2 = vmmov 0   ;;  %s2480_s20 = scalar_lea.vmem %s2457_s1, %s2170_s27  ;;  %s2481_s25 = sld [smem:[#allocation5_spill]]  ;;  %v737_v46 = vlaneseq }
  0x1b   : > { %v2238_v2 = vld [vmem:[#allocation2] sm:$0xff]  ;;  %v2240_v3 = vld [vmem:[#allocation2 + $0x8] sm:$0xff]  ;;  %1910 = vmatprep.subr.bf16.mxu1 %v2084_v17  ;;  %1936 = vmatprep.subr.bf16.mxu0 %v2084_v17  ;;  %s2483_s19 = scalar_lea.vmem %s2460_s4, %s2170_s27  ;;  %s2086_s21 = smov 96   ;;  %vm750_vm3 = vcmask 130048   ;;  %v2088_v49 = vmov -1e+30  }
  0x1c   : > { %v626_v4 = vsel %vm625_vm1, %v2238_v2, 0.0  ;;  %v629_v5 = vsel %vm625_vm1, %v2240_v3, 0.0  ;;  %1911 = vmatpush3.bf16.msra.mxu1 %v2034_v16  ;;  %1914 = vmatprep.mubr.msk.bf16.mxu1 %vm2085_vm2, %v2084_v17  ;;  %v1829_v27 = vld [vmem:[%s2480_s20] ss:$0 sm:$0xff]  ;;  %s2087_s22 = smov 80   ;;  %v738_v47 = vand.u32 127, %v737_v46  ;;  %s2485_s28 = scalar_lea.vmem %s2462_s6, %s2170_s27 }
  0x1d   : > { %627 = vadd.xlane.f32.xlu0 %v626_v4  ;;  %1912 = vmatprep.subr.bf16.mxu1 %v2084_v17  ;;  %v1831_v36 = vld [vmem:[%s2483_s19] ss:$0 sm:$0xff]  ;;  %vm799_vm5 = vcmask 64512   ;;  %s2089_s24 = smov 64   ;;  %s2090_s29 = smov 112   ;;  %vm817_vm6 = vcmask 1043456  }
  0x1e   : > { %1938 = vmatprep.mubr.msk.bf16.mxu0 %vm2085_vm2, %v2084_v17  ;;  %vm739_vm4 = vcmp.lt.s32.totalorder %v738_v47, 5  ;;  %s2091_s2 = smov 48   ;;  %s2484_s26 = sld [smem:[#allocation4_spill]]  ;;  %vm1649_vm7 = vcmask 1040384   ;;  %vm1651_vm8 = vcmask 254976  }
  0x1f   : > { %v2292_v50 = vsel %vm739_vm4, 0.0, %v2088_v49  ;;  %s2487_s19 = scalar_lea.vmem %s2464_s8, %s2170_s27 }
  0x20   : > { %1913 = vmatpush3.bf16.msra.mxu1 %v2035_v18  ;;  %s2482_s30 = scalar_lea.vmem %s2481_s25, %s2170_s27 }
  0x21   : > { %630 = vadd.xlane.f32.xlu0 %v629_v5  ;;  %1918 = vmatprep.subr.bf16.mxu1 %v2084_v17  ;;  %v1830_v31 = vld [vmem:[%s2482_s30] ss:$0 sm:$0xff] }
  0xaa   : > { %v628_v6 = vpop.xlane.xlu0 %627 }
  0xab   : > { %v633_v7 = vmul.f32 0.03125, %v628_v6 }
  0xad   : > { %v635_v8 = vsub.f32 %v2238_v2, %v633_v7 }
  0xae   : > { %v631_v9 = vpop.xlane.xlu0 %630 }
  0xaf   : > { %v634_v10 = vmul.f32 0.03125, %v631_v9  ;;  %v637_v11 = vmul.f32 %v635_v8, %v635_v8 }
  0xb1   : > { %v636_v12 = vsub.f32 %v2240_v3, %v634_v10  ;;  %v639_v13 = vsel %vm625_vm1, %v637_v11, 0.0 }
  0xb2   : > { %640 = vadd.xlane.f32.xlu1 %v639_v13 }
  0xb3   : > { %v638_v14 = vmul.f32 %v636_v12, %v636_v12 }
  0xb5   : > { %v642_v15 = vsel %vm625_vm1, %v638_v14, 0.0 }
  0xb6   : > { %643 = vadd.xlane.f32.xlu1 %v642_v15 }
 0x13f   : > { %v641_v19 = vpop.xlane.xlu1 %640 }
 0x140   : > { %v645_v20 = vmul.f32 0.03125, %v641_v19 }
 0x142   : > { %v647_v21 = vadd.f32 1e-06, %v645_v20 }
 0x143   : > { %v644_v22 = vpop.xlane.xlu1 %643 }
 0x144   : > { %2048 = vrsqrt.f32 %v647_v21  ;;  %v646_v23 = vmul.f32 0.03125, %v644_v22 }
 0x146   : > { %v648_v24 = vadd.f32 1e-06, %v646_v23 }
 0x148   : > { %2050 = vrsqrt.f32 %v648_v24 }
 0x14e   : > { %v2049_v25 = vpop.eup %2048 }
 0x14f   : > { %v651_v26 = vmul.f32 %v2049_v25, %v635_v8 }
 0x151   : > { %v659_v30 = vmul.f32 %v1829_v27, %v651_v26 }
 0x152   : > { %v2051_v28 = vpop.eup %2050 }
 0x153   : > { %v652_v29 = vmul.f32 %v2051_v28, %v636_v12  ;;  %v667_v33 = vadd.f32 %v1830_v31, %v659_v30 }
 0x155   : > { %v660_v32 = vmul.f32 %v1829_v27, %v652_v29  ;;  %v2037_v29 = vld [vmem:[%s2484_s26 + $0x8] sm:$0xff]  }
 0x157   : > { %v668_v34 = vadd.f32 %v1830_v31, %v660_v32 }
 0x159   : > { %v669_v35 = vpack.c.bf16 %v668_v34, %v667_v33  ;;  %v2331_v33 = vld [vmem:[%s2484_s26] sm:$0xff]  }
 0x15b   : > { %1915 = vmatmul.mubr.msk.bf16.vlgmr.msra.gmra.mrb[0].mxu1 %vm625_vm1, %v669_v35 }
 0x15c   : > { %1920 = vmatprep.mubr.msk.bf16.mxu1 %vm2085_vm2, %v2084_v17 }
 0x22e   : > { %v730_v37 = vpop.f32.mrb[0].mxu1 }
 0x22f   : > { %v731_v38 = vadd.f32 %v1831_v36, %v730_v37  ;;  %v1916_v39 = vpop.f32.mrb[1].mxu1 }
 0x230   : > { %v733_v40 = vpop.f32.mrb[2].mxu1 }
 0x231   : > { %v2278_v41 = vpack.c.bf16 %v731_v38, %v731_v38  ;;  %v2280_v42 = vadd.f32 %v1831_v36, %v733_v40  ;;  %v1917_v43 = vpop.f32.mrb[3].mxu1 }
 0x233   : > { %748 = vrot.lane.b32.xlu0 %v2278_v41, %s2086_s21  ;;  %v2317_v21 = vpack.c.bf16 %v2280_v42, %v2280_v42 }
 0x237   : > { %864 = vrot.lane.b32.xlu0 %v2278_v41, %s2087_s22 }
 0x2a5   : > { %v749_v44 = vpop.permute.xlu0 %748 }
 0x2a6   : > { %v755_v45 = vsel %vm750_vm3, %v749_v44, 0 }
 0x2a7   : > { %1919 = vmatpush3.bf16.xpose.msra.mxu1 %v755_v45 }
 0x2a8   : > { %1924 = vmatprep.subr.bf16.mxu1 %v2084_v17 }
 0x2a9   : > { %v865_v5 = vpop.permute.xlu0 %864 }
 0x2aa   : > { %v870_v7 = vsel %vm750_vm3, %v865_v5, 0 }
 0x2ae   : > { %1921 = vmatmul.mubr.msk.bf16.vlgmr.msra.gmra.mrb[4].mxu1 %vm750_vm3, %v2278_v41 }
 0x2af   : > { %1926 = vmatprep.mubr.msk.bf16.mxu1 %vm2085_vm2, %v2084_v17 }
 0x381   : > { %v791_v48 = vpop.f32.mrb[4].mxu1 }
 0x382   : > { %v797_v51 = vmul.f32 0.25, %v791_v48  ;;  %v1922_v52 = vpop.f32.mrb[5].mxu1 }
 0x383   : > { %v794_v53 = vpop.f32.mrb[6].mxu1 }
 0x384   : > { %v1923_v54 = vpop.f32.mrb[7].mxu1  ;;  %v798_v55 = vadd.f32 %v797_v51, %v2292_v50 }
 0x385   : > { %v2361_v54 = vld [vmem:[%s2485_s28] ss:$0 sm:$0xff] }
 0x386   : > { %v800_v56 = vsel %vm799_vm5, %v798_v55, -inf }
 0x387   : > { %801 = vmax.xlane.f32.xlu1 %v800_v56 }
 0x414   : > { %v802_v57 = vpop.xlane.xlu1 %801 }
 0x415   : > { %v803_v58 = vsub.f32 %v798_v55, %v802_v57 }
 0x417   : > { %v804_v59 = vmul.f32 1.442695, %v803_v58 }
 0x419   : > { %2052 = vpow2.f32 %v804_v59 }
 0x423   : > { %v2053_v60 = vpop.eup %2052 }
 0x424   : > { %v806_v61 = vsel %vm799_vm5, %v2053_v60, 0.0 }
 0x425   : > { %807 = vadd.xlane.f32.xlu1 %v806_v61 }
 0x436   : > { %812 = vrot.lane.b32.xlu1 %v2278_v41, %s2089_s24 }
 0x43a   : > { %862 = vrot.lane.b32.xlu1 %v2278_v41, %s2090_s29 }
 0x4b2   : > { %v808_v62 = vpop.xlane.xlu1 %807 }
 0x4b3   : > { %2054 = vrcp.f32 %v808_v62 }
 0x4b6   : > { %v813_v63 = vpop.permute.xlu1 %812 }
 0x4b7   : > { %v819_v0 = vsel %vm817_vm6, %v813_v63, 0 }
 0x4b8   : > { %1925 = vmatpush3.bf16.msra.mxu1 %v819_v0 }
 0x4b9   : > { %1930 = vmatprep.subr.bf16.mxu1 %v2084_v17 }
 0x4ba   : > { %v863_v8 = vpop.permute.xlu1 %862 }
 0x4bd   : > { %v2055_v1 = vpop.eup %2054 }
 0x4be   : > { %v810_v4 = vmul.f32 %v2055_v1, %v2053_v60 }
 0x4c0   : > { %v811_v6 = vpack.c.bf16 %v810_v4, %v810_v4 }
 0x4c2   : > { %1927 = vmatmul.mubr.msk.bf16.vlgmr.msra.gmra.mrb[8].mxu1 %vm799_vm5, %v811_v6 }
 0x4c3   : > { %1931 = vmatpush3.bf16.xpose.msra.mxu1 %v870_v7  ;;  %1932 = vmatprep.mubr.msk.bf16.mxu1 %vm2085_vm2, %v2084_v17 }
 0x4c4   : > { %1942 = vmatprep.subr.bf16.mxu1 %v2084_v17 }
 0x4ca   : > { %1933 = vmatmul.mubr.msk.bf16.vlgmr.msra.gmra.mrb[12].mxu1 %vm750_vm3, %v863_v8 }
 0x4cb   : > { %1944 = vmatprep.mubr.msk.bf16.mxu1 %vm2085_vm2, %v2084_v17  ;;  %1943 = vmatpush3.bf16.msra.mxu1 %v2037_v29 }
 0x4cc   : > { %1954 = vmatprep.subr.bf16.mxu1 %v2084_v17 }
 0x595   : > { %v855_v9 = vpop.f32.mrb[8].mxu1 }
 0x596   : > { %v1928_v10 = vpop.f32.mrb[9].mxu1  ;;  %v861_v35 = vpack.c.bf16 %v855_v9, %v855_v9 }
 0x597   : > { %v858_v11 = vpop.f32.mrb[10].mxu1 }
 0x598   : > { %v1929_v12 = vpop.f32.mrb[11].mxu1 }
 0x59d   : > { %v906_v13 = vpop.f32.mrb[12].mxu1 }
 0x59e   : > { %v912_v14 = vmul.f32 0.25, %v906_v13  ;;  %v1934_v15 = vpop.f32.mrb[13].mxu1 }
 0x59f   : > { %v909_v16 = vpop.f32.mrb[14].mxu1 }
 0x5a0   : > { %v1935_v18 = vpop.f32.mrb[15].mxu1  ;;  %v913_v19 = vadd.f32 %v912_v14, %v2292_v50 }
 0x5a2   : > { %v914_v20 = vsel %vm799_vm5, %v913_v19, -inf }
 0x5a3   : > { %915 = vmax.xlane.f32.xlu0 %v914_v20 }
 0x5b9   : > { %926 = vrot.lane.b32.xlu0 %v2278_v41, %s2091_s2 }
 0x5bd   : > { %1197 = vrot.lane.b32.xlu0 %v2317_v21, %s2087_s22 }
 0x630   : > { %v916_v22 = vpop.xlane.xlu0 %915 }
 0x631   : > { %v917_v23 = vsub.f32 %v913_v19, %v916_v22 }
 0x633   : > { %v918_v24 = vmul.f32 1.442695, %v917_v23 }
 0x634   : > { %v927_v25 = vpop.permute.xlu0 %926 }
 0x635   : > { %2056 = vpow2.f32 %v918_v24  ;;  %v932_v26 = vsel %vm817_vm6, %v927_v25, 0 }
 0x636   : > { %1937 = vmatpush3.bf16.msra.mxu0 %v932_v26 }
 0x637   : > { %1948 = vmatprep.subr.bf16.mxu0 %v2084_v17 }
 0x638   : > { %v1198_v43 = vpop.permute.xlu0 %1197 }
 0x639   : > { %v1203_v47 = vsel %vm750_vm3, %v1198_v43, 0 }
 0x63f   : > { %v2057_v27 = vpop.eup %2056 }
 0x640   : > { %v920_v28 = vsel %vm799_vm5, %v2057_v27, 0.0 }
 0x641   : > { %921 = vadd.xlane.f32.xlu1 %v920_v28 }
 0x652   : > { %1084 = vrot.lane.b32.xlu1 %v2317_v21, %s2086_s21 }
 0x656   : > { %1195 = vrot.lane.b32.xlu1 %v2317_v21, %s2090_s29 }
 0x6ce   : > { %v922_v30 = vpop.xlane.xlu1 %921 }
 0x6cf   : > { %2058 = vrcp.f32 %v922_v30 }
 0x6d2   : > { %v1085_v36 = vpop.permute.xlu1 %1084 }
 0x6d3   : > { %v1090_v41 = vsel %vm750_vm3, %v1085_v36, 0 }
 0x6d6   : > { %v1196_v49 = vpop.permute.xlu1 %1195 }
 0x6d9   : > { %v2059_v31 = vpop.eup %2058 }
 0x6da   : > { %v924_v32 = vmul.f32 %v2059_v31, %v2057_v27 }
 0x6dc   : > { %v925_v34 = vpack.c.bf16 %v924_v32, %v924_v32 }
 0x6de   : > { %1939 = vmatmul.mubr.msk.bf16.vlgmr.msra.gmra.mrb[0].mxu0 %vm799_vm5, %v925_v34 }
 0x6df   : > { %1949 = vmatpush3.bf16.msra.mxu0 %v2331_v33  ;;  %1950 = vmatprep.mubr.msk.bf16.mxu0 %vm2085_vm2, %v2084_v17 }
 0x6e0   : > { %1960 = vmatprep.subr.bf16.mxu0 %v2084_v17 }
 0x6e6   : > { %1951 = vmatmul.mubr.msk.bf16.vlgmr.msra.gmra.mrb[4].mxu0 %vm750_vm3, %v861_v35 }
 0x6e7   : > { %1962 = vmatprep.mubr.msk.bf16.mxu0 %vm2085_vm2, %v2084_v17 }
 0x7b1   : > { %v968_v37 = vpop.f32.mrb[0].mxu0 }
 0x7b2   : > { %v974_v38 = vpack.c.bf16 %v968_v37, %v968_v37  ;;  %v1940_v39 = vpop.f32.mrb[1].mxu0 }
 0x7b3   : > { %v971_v40 = vpop.f32.mrb[2].mxu0 }
 0x7b4   : > { %v1941_v42 = vpop.f32.mrb[3].mxu0  ;;  %1945 = vmatmul.mubr.msk.bf16.vlgmr.msra.gmra.mrb[16].mxu1 %vm750_vm3, %v974_v38 }
 0x7b5   : > { %1955 = vmatpush3.bf16.xpose.msra.mxu1 %v1090_v41  ;;  %1956 = vmatprep.mubr.msk.bf16.mxu1 %vm2085_vm2, %v2084_v17 }
 0x7b6   : > { %1966 = vmatprep.subr.bf16.mxu1 %v2084_v17 }
 0x7b9   : > { %v1067_v44 = vpop.f32.mrb[4].mxu0 }
 0x7ba   : > { %v1952_v45 = vpop.f32.mrb[5].mxu0 }
 0x7bb   : > { %v1070_v46 = vpop.f32.mrb[6].mxu0 }
 0x7bc   : > { %v1953_v48 = vpop.f32.mrb[7].mxu0  ;;  %1957 = vmatmul.mubr.msk.bf16.vlgmr.msra.gmra.mrb[20].mxu1 %vm750_vm3, %v2317_v21 }
 0x7bd   : > { %1967 = vmatpush3.bf16.xpose.msra.mxu1 %v1203_v47  ;;  %1968 = vmatprep.mubr.msk.bf16.mxu1 %vm2085_vm2, %v2084_v17 }
 0x7be   : > { %1978 = vmatprep.subr.bf16.mxu1 %v2084_v17 }
 0x7c4   : > { %1969 = vmatmul.mubr.msk.bf16.vlgmr.msra.gmra.mrb[24].mxu1 %vm750_vm3, %v1196_v49 }
 0x7c5   : > { %1979 = vmatpush3.bf16.msra.mxu1 %v2037_v29  ;;  %1980 = vmatprep.mubr.msk.bf16.mxu1 %vm2085_vm2, %v2084_v17 }
 0x7c6   : > { %1990 = vmatprep.subr.bf16.mxu1 %v2084_v17 }
 0x887   : > { %v1018_v51 = vpop.f32.mrb[16].mxu1 }
 0x888   : > { %v1068_v52 = vadd.f32 %v1067_v44, %v1018_v51  ;;  %v1946_v53 = vpop.f32.mrb[17].mxu1 }
 0x889   : > { %v1021_v55 = vpop.f32.mrb[18].mxu1 }
 0x88a   : > { %v1073_v56 = vadd.f32 %v1068_v52, %v2238_v2  ;;  %v1947_v57 = vpop.f32.mrb[19].mxu1 }
 0x88c   : > { %v1080_v58 = vadd.f32 %v2361_v54, %v1073_v56 }
 0x88e   : > { %1081 = vst.msk [vmem:[#allocation2] sm:$0xff] %vm625_vm1, %v1080_v58 }
 0x88f   : > { %v1126_v59 = vpop.f32.mrb[20].mxu1 }
 0x890   : > { %v1132_v60 = vmul.f32 0.25, %v1126_v59  ;;  %v1958_v61 = vpop.f32.mrb[21].mxu1 }
 0x891   : > { %v1129_v62 = vpop.f32.mrb[22].mxu1 }
 0x892   : > { %v1959_v63 = vpop.f32.mrb[23].mxu1  ;;  %v1133_v0 = vadd.f32 %v1132_v60, %v2292_v50 }
 0x894   : > { %v1134_v1 = vsel %vm799_vm5, %v1133_v0, -inf }
 0x895   : > { %1135 = vmax.xlane.f32.xlu0 %v1134_v1  ;;  %v2372_v10 = vld [vmem:[#allocation2] sm:$0xff] }
 0x896   : > { %v1401_v11 = vsel %vm625_vm1, %v2372_v10, 0.0 }
 0x897   : > { %v1239_v4 = vpop.f32.mrb[24].mxu1 }
 0x898   : > { %v1245_v5 = vmul.f32 0.25, %v1239_v4  ;;  %v1970_v6 = vpop.f32.mrb[25].mxu1 }
 0x899   : > { %v1242_v7 = vpop.f32.mrb[26].mxu1  ;;  %v2039_v6 = vld [vmem:[%s2210_s3 + $0x8] sm:$0xff]  }
 0x89a   : > { %v1971_v2 = vpop.f32.mrb[27].mxu1  ;;  %v1246_v8 = vadd.f32 %v1245_v5, %v2292_v50  ;;  %v2038_v5 = vld [vmem:[%s2210_s3] sm:$0xff]   ;;  %s2486_s3 = scalar_lea.vmem %s2463_s7, %s2170_s27 }
 0x89c   : > { %v1247_v9 = vsel %vm799_vm5, %v1246_v8, -inf }
 0x89d   : > { %1248 = vmax.xlane.f32.xlu1 %v1247_v9 }
 0x8ae   : > { %1259 = vrot.lane.b32.xlu1 %v2317_v21, %s2091_s2 }
 0x8d2   : > { %1402 = vadd.xlane.f32.xlu1 %v1401_v11 }
 0x922   : > { %v1136_v12 = vpop.xlane.xlu0 %1135 }
 0x923   : > { %v1137_v13 = vsub.f32 %v1133_v0, %v1136_v12 }
 0x925   : > { %v1138_v14 = vmul.f32 1.442695, %v1137_v13 }
 0x927   : > { %2060 = vpow2.f32 %v1138_v14 }
 0x92a   : > { %v1249_v15 = vpop.xlane.xlu1 %1248 }
 0x92b   : > { %v1250_v16 = vsub.f32 %v1246_v8, %v1249_v15  ;;  %v1850_v15 = vld [vmem:[%s2486_s3] ss:$0 sm:$0xff] }
 0x92d   : > { %v1251_v18 = vmul.f32 1.442695, %v1250_v16 }
 0x92e   : > { %v1260_v29 = vpop.permute.xlu1 %1259 }
 0x92f   : > { %2062 = vpow2.f32 %v1251_v18  ;;  %v1265_v31 = vsel %vm817_vm6, %v1260_v29, 0  ;;  %v2044_v29 = vld [vmem:[%s2220_s14 + $0x20] sm:$0xff]  }
 0x931   : > { %v2061_v50 = vpop.eup %2060 }
 0x932   : > { %v1140_v19 = vsel %vm799_vm5, %v2061_v50, 0.0 }
 0x933   : > { %1141 = vadd.xlane.f32.xlu0 %v1140_v19  ;;  %v1851_v19 = vld [vmem:[%s2487_s19] ss:$0 sm:$0xff] }
 0x939   : > { %v2063_v20 = vpop.eup %2062 }
 0x93a   : > { %v1253_v22 = vsel %vm799_vm5, %v2063_v20, 0.0 }
 0x93b   : > { %1254 = vadd.xlane.f32.xlu0 %v1253_v22 }
 0x951   : > { %1146 = vrot.lane.b32.xlu0 %v2317_v21, %s2089_s24 }
 0x95f   : > { %v1403_v56 = vpop.xlane.xlu1 %1402 }
 0x960   : > { %v1407_v58 = vmul.f32 0.03125, %v1403_v56 }
 0x962   : > { %v1409_v59 = vsub.f32 %v2372_v10, %v1407_v58 }
 0x964   : > { %v1411_v62 = vmul.f32 %v1409_v59, %v1409_v59 }
 0x9c0   : > { %v1142_v23 = vpop.xlane.xlu0 %1141 }
 0x9c1   : > { %2064 = vrcp.f32 %v1142_v23 }
 0x9c8   : > { %v1255_v24 = vpop.xlane.xlu0 %1254 }
 0x9c9   : > { %2066 = vrcp.f32 %v1255_v24 }
 0x9cb   : > { %v2065_v25 = vpop.eup %2064 }
 0x9cc   : > { %v1144_v26 = vmul.f32 %v2065_v25, %v2061_v50  ;;  %v1147_v27 = vpop.permute.xlu0 %1146  ;;  %v2040_v25 = vld [vmem:[%s2220_s14] sm:$0xff]  }
 0x9cd   : > { %v1152_v28 = vsel %vm817_vm6, %v1147_v27, 0  ;;  %v2042_v27 = vld [vmem:[%s2220_s14 + $0x10] sm:$0xff]  }
 0x9ce   : > { %1961 = vmatpush3.bf16.msra.mxu0 %v1152_v28  ;;  %v1145_v30 = vpack.c.bf16 %v1144_v26, %v1144_v26  ;;  %v2041_v26 = vld [vmem:[%s2220_s14 + $0x8] sm:$0xff]   ;;  %v2043_v28 = vld [vmem:[%s2220_s14 + $0x18] sm:$0xff]  }
 0x9cf   : > { %1972 = vmatprep.subr.bf16.mxu0 %v2084_v17 }
 0x9d1   : > { %1963 = vmatmul.mubr.msk.bf16.vlgmr.msra.gmra.mrb[8].mxu0 %vm799_vm5, %v1145_v30  ;;  %v2045_v30 = vld [vmem:[%s2220_s14 + $0x28] sm:$0xff]  }
 0x9d2   : > { %1973 = vmatpush3.bf16.msra.mxu0 %v1265_v31  ;;  %1974 = vmatprep.mubr.msk.bf16.mxu0 %vm2085_vm2, %v2084_v17  ;;  %v2046_v31 = vld [vmem:[%s2220_s14 + $0x30] sm:$0xff]  }
 0x9d3   : > { %v2067_v21 = vpop.eup %2066  ;;  %1984 = vmatprep.subr.bf16.mxu0 %v2084_v17 }
 0x9d4   : > { %v1257_v32 = vmul.f32 %v2067_v21, %v2063_v20  ;;  %v2047_v21 = vld [vmem:[%s2220_s14 + $0x38] sm:$0xff]  }
 0x9d6   : > { %v1258_v34 = vpack.c.bf16 %v1257_v32, %v1257_v32  ;;  %v1852_v32 = vld [vmem:[%s598_s5] ss:$0 sm:$0xff] }
 0x9d9   : > { %1975 = vmatmul.mubr.msk.bf16.vlgmr.msra.gmra.mrb[12].mxu0 %vm799_vm5, %v1258_v34 }
 0x9da   : > { %1985 = vmatpush3.bf16.msra.mxu0 %v2331_v33  ;;  %1986 = vmatprep.mubr.msk.bf16.mxu0 %vm2085_vm2, %v2084_v17 }
 0x9db   : > { %1998 = vmatprep.subr.bf16.mxu0 %v2084_v17 }
 0xaa4   : > { %v1188_v35 = vpop.f32.mrb[8].mxu0 }
 0xaa5   : > { %v1194_v36 = vpack.c.bf16 %v1188_v35, %v1188_v35  ;;  %v1964_v37 = vpop.f32.mrb[9].mxu0 }
 0xaa6   : > { %v1191_v38 = vpop.f32.mrb[10].mxu0 }
 0xaa7   : > { %v1965_v39 = vpop.f32.mrb[11].mxu0  ;;  %1987 = vmatmul.mubr.msk.bf16.vlgmr.msra.gmra.mrb[16].mxu0 %vm750_vm3, %v1194_v36 }
 0xaa8   : > { %2014 = vmatprep.mubr.msk.bf16.mxu0 %vm2085_vm2, %v2084_v17  ;;  %1999 = vmatpush3.bf16.msra.mxu0 %v2040_v25 }
 0xaa9   : > { %2000 = vmatprep.subr.bf16.mxu0 %v2084_v17 }
 0xaac   : > { %v1301_v40 = vpop.f32.mrb[12].mxu0  ;;  %2001 = vmatpush3.bf16.msra.mxu0 %v2041_v26 }
 0xaad   : > { %v1307_v41 = vpack.c.bf16 %v1301_v40, %v1301_v40  ;;  %v1976_v42 = vpop.f32.mrb[13].mxu0  ;;  %2002 = vmatprep.subr.bf16.mxu0 %v2084_v17 }
 0xaae   : > { %v1304_v43 = vpop.f32.mrb[14].mxu0 }
 0xaaf   : > { %v1977_v33 = vpop.f32.mrb[15].mxu0  ;;  %1981 = vmatmul.mubr.msk.bf16.vlgmr.msra.gmra.mrb[28].mxu1 %vm750_vm3, %v1307_v41 }
 0xab0   : > { %1994 = vmatprep.mubr.msk.bf16.mxu1 %vm2085_vm2, %v2084_v17  ;;  %1991 = vmatpush3.bf16.msra.mxu1 %v2038_v5 }
 0xab1   : > { %1992 = vmatprep.subr.bf16.mxu1 %v2084_v17  ;;  %2003 = vmatpush3.bf16.msra.mxu0 %v2042_v27 }
 0xab2   : > { %2004 = vmatprep.subr.bf16.mxu0 %v2084_v17 }
 0xab4   : > { %1993 = vmatpush3.bf16.msra.mxu1 %v2039_v6 }
 0xab5   : > { %2005 = vmatpush3.bf16.msra.mxu0 %v2043_v28 }
 0xab6   : > { %2006 = vmatprep.subr.bf16.mxu0 %v2084_v17 }
 0xab9   : > { %2007 = vmatpush3.bf16.msra.mxu0 %v2044_v29 }
 0xaba   : > { %2008 = vmatprep.subr.bf16.mxu0 %v2084_v17 }
 0xabd   : > { %2009 = vmatpush3.bf16.msra.mxu0 %v2045_v30 }
 0xabe   : > { %2010 = vmatprep.subr.bf16.mxu0 %v2084_v17 }
 0xac1   : > { %2011 = vmatpush3.bf16.msra.mxu0 %v2046_v31 }
 0xac2   : > { %2012 = vmatprep.subr.bf16.mxu0 %v2084_v17 }
 0xac5   : > { %2013 = vmatpush3.bf16.msra.mxu0 %v2047_v21 }
 0xb7a   : > { %v1388_v44 = vpop.f32.mrb[16].mxu0 }
 0xb7b   : > { %v1988_v45 = vpop.f32.mrb[17].mxu0 }
 0xb7c   : > { %v1391_v46 = vpop.f32.mrb[18].mxu0 }
 0xb7d   : > { %v1989_v47 = vpop.f32.mrb[19].mxu0 }
 0xb82   : > { %v1345_v48 = vpop.f32.mrb[28].mxu1 }
 0xb83   : > { %v1389_v49 = vadd.f32 %v1388_v44, %v1345_v48  ;;  %v1982_v51 = vpop.f32.mrb[29].mxu1 }
 0xb84   : > { %v1348_v52 = vpop.f32.mrb[30].mxu1 }
 0xb85   : > { %v1394_v53 = vadd.f32 %v1389_v49, %v2240_v3  ;;  %v1983_v55 = vpop.f32.mrb[31].mxu1  ;;  %v1413_v3 = vsel %vm625_vm1, %v1411_v62, 0.0 }
 0xb87   : > { %v1395_v57 = vadd.f32 %v2361_v54, %v1394_v53 }
 0xb89   : > { %1396 = vst.msk [vmem:[#allocation2 + $0x8] sm:$0xff] %vm625_vm1, %v1395_v57 }
 0xb90   : > { %v2402_v60 = vld [vmem:[#allocation2 + $0x8] sm:$0xff] }
 0xb91   : > { %v1404_v61 = vsel %vm625_vm1, %v2402_v60, 0.0 }
 0xb92   : > { %1405 = vadd.xlane.f32.xlu0 %v1404_v61 }
 0xb96   : > { %1414 = vadd.xlane.f32.xlu0 %v1413_v3 }
 0xc1f   : > { %v1406_v63 = vpop.xlane.xlu0 %1405 }
 0xc20   : > { %v1408_v0 = vmul.f32 0.03125, %v1406_v63 }
 0xc22   : > { %v1410_v54 = vsub.f32 %v2402_v60, %v1408_v0 }
 0xc23   : > { %v1415_v7 = vpop.xlane.xlu0 %1414 }
 0xc24   : > { %v1412_v1 = vmul.f32 %v1410_v54, %v1410_v54  ;;  %v1419_v2 = vmul.f32 0.03125, %v1415_v7 }
 0xc26   : > { %v1416_v4 = vsel %vm625_vm1, %v1412_v1, 0.0  ;;  %v1421_v8 = vadd.f32 1e-06, %v1419_v2 }
 0xc27   : > { %1417 = vadd.xlane.f32.xlu1 %v1416_v4 }
 0xc28   : > { %2068 = vrsqrt.f32 %v1421_v8 }
 0xc32   : > { %v2069_v13 = vpop.eup %2068 }
 0xc33   : > { %v1425_v14 = vmul.f32 %v2069_v13, %v1409_v59  ;;  %v1856_v59 = vld [vmem:[%s606_s18] ss:$0 sm:$0xff] }
 0xc35   : > { %v1433_v18 = vmul.f32 %v1850_v15, %v1425_v14 }
 0xc37   : > { %v1441_v22 = vadd.f32 %v1851_v19, %v1433_v18 }
 0xcb4   : > { %v1418_v9 = vpop.xlane.xlu1 %1417 }
 0xcb5   : > { %v1420_v11 = vmul.f32 0.03125, %v1418_v9 }
 0xcb7   : > { %v1422_v12 = vadd.f32 1e-06, %v1420_v11 }
 0xcb9   : > { %2070 = vrsqrt.f32 %v1422_v12 }
 0xcc3   : > { %v2071_v16 = vpop.eup %2070 }
 0xcc4   : > { %v1426_v50 = vmul.f32 %v2071_v16, %v1410_v54 }
 0xcc6   : > { %v1434_v20 = vmul.f32 %v1850_v15, %v1426_v50 }
 0xcc8   : > { %v1442_v23 = vadd.f32 %v1851_v19, %v1434_v20 }
 0xcca   : > { %v1443_v24 = vpack.c.bf16 %v1442_v23, %v1441_v22 }
 0xccc   : > { %1995 = vmatmul.mubr.msk.bf16.vlgmr.msra.gmra.mrb[32].mxu1 %vm625_vm1, %v1443_v24 }
 0xd9f   : > { %v1504_v34 = vpop.f32.mrb[32].mxu1 }
 0xda0   : > { %v1505_v35 = vadd.f32 %v1852_v32, %v1504_v34  ;;  %v1996_v36 = vpop.f32.mrb[33].mxu1 }
 0xda1   : > { %v1507_v37 = vpop.f32.mrb[34].mxu1 }
 0xda2   : > { %v1513_v38 = vmul.f32 0.044715, %v1505_v35  ;;  %v1508_v39 = vadd.f32 %v1852_v32, %v1507_v37  ;;  %v1997_v40 = vpop.f32.mrb[35].mxu1  ;;  %v1511_v52 = vmul.f32 0.5, %v1505_v35 }
 0xda4   : > { %v1515_v41 = vmul.f32 %v1513_v38, %v1505_v35  ;;  %v1514_v42 = vmul.f32 0.044715, %v1508_v39  ;;  %v1512_v53 = vmul.f32 0.5, %v1508_v39 }
 0xda6   : > { %v1517_v43 = vmul.f32 %v1515_v41, %v1505_v35  ;;  %v1516_v33 = vmul.f32 %v1514_v42, %v1508_v39 }
 0xda8   : > { %v1519_v44 = vadd.f32 %v1517_v43, %v1505_v35  ;;  %v1518_v45 = vmul.f32 %v1516_v33, %v1508_v39 }
 0xdaa   : > { %v1521_v17 = vmul.f32 0.7978846, %v1519_v44  ;;  %v1520_v46 = vadd.f32 %v1518_v45, %v1508_v39 }
 0xdac   : > { %2072 = vtanh.f32 %v1521_v17  ;;  %v1522_v47 = vmul.f32 0.7978846, %v1520_v46 }
 0xdae   : > { %2074 = vtanh.f32 %v1522_v47 }
 0xdb6   : > { %v2073_v48 = vpop.eup %2072 }
 0xdb7   : > { %v1525_v49 = vadd.f32 1.0, %v2073_v48 }
 0xdb8   : > { %v2075_v51 = vpop.eup %2074 }
 0xdb9   : > { %v1526_v55 = vadd.f32 1.0, %v2075_v51  ;;  %v1527_v56 = vmul.f32 %v1525_v49, %v1511_v52 }
 0xdbb   : > { %v1528_v57 = vmul.f32 %v1526_v55, %v1512_v53 }
 0xdbd   : > { %v1529_v58 = vpack.c.bf16 %v1528_v57, %v1527_v56 }
 0xdbf   : > { %2015 = vmatmul.mubr.bf16.vlgmr.msra.gmra.mrb[20].mxu0 %v1529_v58 }
 0xe92   : > { %v1635_v61 = vpop.f32.mrb[20].mxu0 }
 0xe93   : > { %v1636_v62 = vadd.f32 %v1856_v59, %v1635_v61  ;;  %v2016_v3 = vpop.f32.mrb[21].mxu0 }
 0xe94   : > { %v1638_v63 = vpop.f32.mrb[22].mxu0 }
 0xe95   : > { %v1642_v0 = vadd.f32 %v1636_v62, %v2372_v10  ;;  %v1639_v54 = vadd.f32 %v1856_v59, %v1638_v63  ;;  %v2017_v1 = vpop.f32.mrb[23].mxu0 }
 0xe97   : > { %1644 = vst.msk [vmem:[#allocation2] sm:$0xff] %vm625_vm1, %v1642_v0  ;;  %v1643_v4 = vadd.f32 %v1639_v54, %v2402_v60 }
 0xe99   : > { %1645 = vst.msk [vmem:[#allocation2 + $0x8] sm:$0xff] %vm625_vm1, %v1643_v4  ;;  %v1647_v5 = vrot.slane %v1643_v4, 7 }
 0xe9b   : > { %v1650_v6 = vsel %vm1649_vm7, %v1642_v0, %v1647_v5 }
 0xe9c   : > { %1652 = vst.msk [vmem:[%s2230_s17] sm:$0x3] %vm1651_vm8, %v1650_v6 }
 0xe9d PF: > { %s2488_s27 = sld [smem:[#allocation3_spill]] }
 0xea3   : > { %s23_s25 = sadd.s32 1, %s2488_s27  }
 0xea4   : > { %p20_p5 = scmp.ge.s32.totalorder %s23_s25, 6  }
 0xea6   :  { %22 = sbr.rel (!%p20_p5) target bundleno = 4 (0x4), region = 139 }

</bundles_post_ra>
